<compile_context>
chip_gen: v7x
topology: tpu7x:2x2x1
jax: 0.10.0
libtpu: 0.0.40
codegen_flags: <defaults>
</compile_context>

<pallas_src>
import jax
import jax.numpy as jnp
import numpy as np
from jax.experimental import pallas as pl
from jax.experimental import pallas as pallas  # noqa: F401  (kept for clarity)
from jax.experimental.pallas import tpu as pltpu  # noqa: F401


def _fused_kernel(x1_ref, p1_ref, p2_ref, b1_ref, b2_ref, b3_ref, o_ref):
    """Fused CausCnnBlock forward, both batch elements stacked along M.

    x1_ref : (N*W1, 3*H*Cin)        host-built causal time-im2col of the input.
    p1_ref : (3*N*W2, N*W1)         trim + AvgPool(1,3) + causal pad + kw shift,
                                    block-diagonal over batch, stacked over kw.
    p2_ref : (3*N*W3, N*W2)         same for AvgPool(1,4).
    b1_ref : (3*H*Cin, H*Chid)      conv1 freq-taps/channel-mix/freq-pad folded,
                                    kw concatenated along K.
    b2_ref : (3, H*Chid, H*Chid)    conv2 block-banded matrices, one per kw.
    b3_ref : (3, H*Chid, H*Cout)    conv3 block-banded matrices, one per kw.
    o_ref  : (N*W3, H*Cout)         tanh already applied.
    """
    nw2 = p1_ref.shape[0] // 3
    nw3 = p2_ref.shape[0] // 3

    # ---- stage 1: one dot (time-im2col folded on host), ReLU ----------------
    h1 = jnp.maximum(
        jnp.dot(x1_ref[...], b1_ref[...], preferred_element_type=jnp.float32), 0.0)

    # ---- stage 2: pool/trim/pad/shift in one dot, then 3 aligned tap dots ---
    g1 = jnp.dot(p1_ref[...], h1, preferred_element_type=jnp.float32)
    acc2 = jnp.dot(g1[0:nw2], b2_ref[0], preferred_element_type=jnp.float32)
    acc2 = acc2 + jnp.dot(g1[nw2:2 * nw2], b2_ref[1],
                          preferred_element_type=jnp.float32)
    acc2 = acc2 + jnp.dot(g1[2 * nw2:3 * nw2], b2_ref[2],
                          preferred_element_type=jnp.float32)
    h2 = jnp.maximum(acc2, 0.0)

    # ---- stage 3: pool/trim/pad/shift, 3 aligned tap dots, tanh -------------
    g2 = jnp.dot(p2_ref[...], h2, preferred_element_type=jnp.float32)
    acc3 = jnp.dot(g2[0:nw3], b3_ref[0], preferred_element_type=jnp.float32)
    acc3 = acc3 + jnp.dot(g2[nw3:2 * nw3], b3_ref[1],
                          preferred_element_type=jnp.float32)
    acc3 = acc3 + jnp.dot(g2[2 * nw3:3 * nw3], b3_ref[2],
                          preferred_element_type=jnp.float32)
    o_ref[...] = jnp.tanh(acc3).astype(o_ref.dtype)


def _band_weights(w_oihw, H):
    """Fold a 3x3 conv's freq taps, channel mixing and freq zero-padding (pad=1)
    into 3 block-banded (H*Cin, H*Cout) matrices, one per time tap kw."""
    Cout, Cin, KH, KW = w_oihw.shape
    blk = jnp.transpose(w_oihw, (2, 3, 1, 0))            # (KH, KW, Cin, Cout)
    shift = np.zeros((KH, H, H), np.float32)             # shift[kh, h_in, h_out]
    for kh in range(KH):
        for h in range(H):
            h_in = h + kh - 1                            # freq padding = 1
            if 0 <= h_in < H:
                shift[kh, h_in, h] = 1.0
    band = jnp.einsum("kab,kwio->waibo", jnp.asarray(shift), blk)  # (KW,H,Ci,H,Co)
    return band.reshape(KW, H * Cin, H * Cout)


def _shifted_pool_blockdiag(N, W, pool, pad, kw_taps=3):
    """(kw_taps*N*Wo, N*W) constant folding:
         causal trim [..., :-pad]  +  AvgPool2d((1, pool))  +  next stage's
         causal left pad (`pad` zero rows)  +  the kw row-shift of the next conv,
       block-diagonal over the batch so taps never leak across batch elements.
       Row index = kw*(N*Wo) + n*Wo + t ; column index = n*W + s."""
    Wo = W // pool
    base = np.zeros((Wo + pad, W), np.float32)
    for o in range(Wo):
        base[o + pad, o * pool:(o + 1) * pool] = 1.0 / pool
    out = np.zeros((kw_taps, N, Wo, N, W), np.float32)
    for kw in range(kw_taps):
        for n in range(N):
            out[kw, n, :, n, :] = base[kw:kw + Wo]
    return jnp.asarray(out.reshape(kw_taps * N * Wo, N * W))


def caus_cnn_block(x_nchw, w1_oihw, w2_oihw, w3_oihw, pool1=3, pool2=4, pad_t=2):
    """Pallas implementation of CausCnnBlock.forward.  I/O in PyTorch NCHW layout."""
    N, Cin, H, W1 = x_nchw.shape
    Chid = w1_oihw.shape[0]
    Cout = w3_oihw.shape[0]
    W2 = W1 // pool1
    W3 = W2 // pool2

    # ---- input layout glue: NCHW -> (N, W1, H*Cin), causal left pad, im2col ---
    xt = jnp.transpose(x_nchw, (0, 3, 2, 1)).reshape(N, W1, H * Cin)
    xpad = jnp.pad(xt, ((0, 0), (pad_t, 0), (0, 0)))          # (N, W1+2, H*Cin)
    x1 = jnp.concatenate([xpad[:, kw:kw + W1, :] for kw in range(3)], axis=-1)
    x1 = x1.reshape(N * W1, 3 * H * Cin)                      # kw-major K layout

    # ---- fold weights / pooling into matmul operands (once, on host) ---------
    b1 = _band_weights(w1_oihw, H).reshape(3 * H * Cin, H * Chid)
    b2 = _band_weights(w2_oihw, H)                             # (3, H*Chid, H*Chid)
    b3 = _band_weights(w3_oihw, H)                             # (3, H*Chid, H*Cout)
    p1 = _shifted_pool_blockdiag(N, W1, pool1, pad_t)          # (3*N*W2, N*W1)
    p2 = _shifted_pool_blockdiag(N, W2, pool2, pad_t)          # (3*N*W3, N*W2)

    # Single invocation (no grid): every operand DMA'd exactly once, everything
    # stays resident in VMEM, one launch for the whole block.
    out = pl.pallas_call(
        _fused_kernel,
        out_shape=jax.ShapeDtypeStruct((N * W3, H * Cout), jnp.float32),
    )(x1, p1, p2, b1, b2, b3)

    # (N*W3, H*Cout) -> NCHW (N, Cout, H, W3); lane index was h*Cout + co.
    return jnp.transpose(out.reshape(N, W3, H, Cout), (0, 3, 2, 1))


def _reference_forward(x, w1, w2, w3):
    """Pure-JAX reference mirroring the PyTorch forward exactly (NCHW)."""
    def conv(x, w):
        return jax.lax.conv_general_dilated(
            x, w, window_strides=(1, 1), padding=((1, 1), (2, 2)),
            dimension_numbers=("NCHW", "OIHW", "NCHW"),
            precision=jax.lax.Precision.HIGHEST)

    def avgpool_w(x, p):
        N, C, H, W = x.shape
        Wt = (W // p) * p
        return x[:, :, :, :Wt].reshape(N, C, H, W // p, p).mean(axis=-1)

    out = conv(x, w1)
    out = jnp.maximum(out, 0.0)
    out = out[:, :, :, :-2]
    out = avgpool_w(out, 3)
    out = conv(out, w2)
    out = jnp.maximum(out, 0.0)
    out = out[:, :, :, :-2]
    out = avgpool_w(out, 4)
    out = conv(out, w3)
    out = out[:, :, :, :-2]
    out = jnp.tanh(out)
    return out


if __name__ == "__main__":
    # Small shapes: batch=2, inp_dim=4, out_dim=4, cnn_hidden_dim=32, freq=8, time=48.
    N, Cin, Cout, Chid, F, T = 2, 4, 4, 32, 8, 48

    key = jax.random.PRNGKey(0)
    kx, k1, k2, k3 = jax.random.split(key, 4)
    x = jax.random.normal(kx, (N, Cin, F, T), jnp.float32)
    # PyTorch Conv2d weight layout: (out_channels, in_channels, kH, kW), bias=False.
    w1 = jax.random.normal(k1, (Chid, Cin, 3, 3), jnp.float32) * 0.1
    w2 = jax.random.normal(k2, (Chid, Chid, 3, 3), jnp.float32) * 0.1
    w3 = jax.random.normal(k3, (Cout, Chid, 3, 3), jnp.float32) * 0.1

    fwd = jax.jit(caus_cnn_block)
    out = jax.block_until_ready(fwd(x, w1, w2, w3))
    ref = jax.block_until_ready(_reference_forward(x, w1, w2, w3))

    assert out.shape == (N, Cout, F, T // 12), out.shape
    np.testing.assert_allclose(np.asarray(out), np.asarray(ref), rtol=2e-3, atol=2e-3)
    print("KERNEL_OK")
</pallas_src>

<mosaic_0001>
module attributes {stable_mosaic.version = 11 : i64} {
  func.func @_fused_kernel(%arg0: memref<96x96xf32, #tpu.memory_space<vmem>>, %arg1: memref<96x96xf32, #tpu.memory_space<vmem>>, %arg2: memref<24x32xf32, #tpu.memory_space<vmem>>, %arg3: memref<96x256xf32, #tpu.memory_space<vmem>>, %arg4: memref<3x256x256xf32, #tpu.memory_space<vmem>>, %arg5: memref<3x256x32xf32, #tpu.memory_space<vmem>>, %arg6: memref<8x32xf32, #tpu.memory_space<vmem>>) attributes {dimension_semantics = [], scalar_prefetch = 0 : i64, scratch_operands = 0 : i64, tpu.core_type = #tpu.core_type<tc>} {
    %c0 = arith.constant 0 : index
    %c0_0 = arith.constant 0 : index
    %0 = vector.load %arg0[%c0, %c0_0] : memref<96x96xf32, #tpu.memory_space<vmem>>, vector<96x96xf32>
    %c0_1 = arith.constant 0 : index
    %c0_2 = arith.constant 0 : index
    %1 = vector.load %arg3[%c0_1, %c0_2] : memref<96x256xf32, #tpu.memory_space<vmem>>, vector<96x256xf32>
    %cst = arith.constant dense<0.000000e+00> : vector<96x256xf32>
    %2 = tpu.matmul %0, %1, %cst {dimension_numbers = #tpu.dot_dimension_numbers<[1], [0], [0], [1], [0, 0, 1, 1], [], []>} : vector<96x96xf32>, vector<96x256xf32>, vector<96x256xf32> -> vector<96x256xf32>
    %cst_3 = arith.constant 0.000000e+00 : f32
    %3 = vector.broadcast %cst_3 : f32 to vector<96x256xf32>
    %4 = arith.maximumf %2, %3 : vector<96x256xf32>
    %c0_4 = arith.constant 0 : index
    %c0_5 = arith.constant 0 : index
    %5 = vector.load %arg1[%c0_4, %c0_5] : memref<96x96xf32, #tpu.memory_space<vmem>>, vector<96x96xf32>
    %cst_6 = arith.constant dense<0.000000e+00> : vector<96x256xf32>
    %6 = tpu.matmul %5, %4, %cst_6 {dimension_numbers = #tpu.dot_dimension_numbers<[1], [0], [0], [1], [0, 0, 1, 1], [], []>} : vector<96x96xf32>, vector<96x256xf32>, vector<96x256xf32> -> vector<96x256xf32>
    %7 = vector.extract_strided_slice %6 {offsets = [0, 0], sizes = [32, 256], strides = [1, 1]} : vector<96x256xf32> to vector<32x256xf32>
    %c0_7 = arith.constant 0 : index
    %c0_8 = arith.constant 0 : index
    %c0_9 = arith.constant 0 : index
    %8 = vector.load %arg4[%c0_7, %c0_8, %c0_9] : memref<3x256x256xf32, #tpu.memory_space<vmem>>, vector<1x256x256xf32>
    %9 = vector.shape_cast %8 : vector<1x256x256xf32> to vector<256x256xf32>
    %cst_10 = arith.constant dense<0.000000e+00> : vector<32x256xf32>
    %10 = tpu.matmul %7, %9, %cst_10 {dimension_numbers = #tpu.dot_dimension_numbers<[1], [0], [0], [1], [0, 0, 1, 1], [], []>} : vector<32x256xf32>, vector<256x256xf32>, vector<32x256xf32> -> vector<32x256xf32>
    %11 = vector.extract_strided_slice %6 {offsets = [32, 0], sizes = [32, 256], strides = [1, 1]} : vector<96x256xf32> to vector<32x256xf32>
    %c1 = arith.constant 1 : index
    %c0_11 = arith.constant 0 : index
    %c0_12 = arith.constant 0 : index
    %12 = vector.load %arg4[%c1, %c0_11, %c0_12] : memref<3x256x256xf32, #tpu.memory_space<vmem>>, vector<1x256x256xf32>
    %13 = vector.shape_cast %12 : vector<1x256x256xf32> to vector<256x256xf32>
    %cst_13 = arith.constant dense<0.000000e+00> : vector<32x256xf32>
    %14 = tpu.matmul %11, %13, %cst_13 {dimension_numbers = #tpu.dot_dimension_numbers<[1], [0], [0], [1], [0, 0, 1, 1], [], []>} : vector<32x256xf32>, vector<256x256xf32>, vector<32x256xf32> -> vector<32x256xf32>
    %15 = arith.addf %10, %14 : vector<32x256xf32>
    %16 = vector.extract_strided_slice %6 {offsets = [64, 0], sizes = [32, 256], strides = [1, 1]} : vector<96x256xf32> to vector<32x256xf32>
    %c2 = arith.constant 2 : index
    %c0_14 = arith.constant 0 : index
    %c0_15 = arith.constant 0 : index
    %17 = vector.load %arg4[%c2, %c0_14, %c0_15] : memref<3x256x256xf32, #tpu.memory_space<vmem>>, vector<1x256x256xf32>
    %18 = vector.shape_cast %17 : vector<1x256x256xf32> to vector<256x256xf32>
    %cst_16 = arith.constant dense<0.000000e+00> : vector<32x256xf32>
    %19 = tpu.matmul %16, %18, %cst_16 {dimension_numbers = #tpu.dot_dimension_numbers<[1], [0], [0], [1], [0, 0, 1, 1], [], []>} : vector<32x256xf32>, vector<256x256xf32>, vector<32x256xf32> -> vector<32x256xf32>
    %20 = arith.addf %15, %19 : vector<32x256xf32>
    %cst_17 = arith.constant 0.000000e+00 : f32
    %21 = vector.broadcast %cst_17 : f32 to vector<32x256xf32>
    %22 = arith.maximumf %20, %21 : vector<32x256xf32>
    %c0_18 = arith.constant 0 : index
    %c0_19 = arith.constant 0 : index
    %23 = vector.load %arg2[%c0_18, %c0_19] : memref<24x32xf32, #tpu.memory_space<vmem>>, vector<24x32xf32>
    %cst_20 = arith.constant dense<0.000000e+00> : vector<24x256xf32>
    %24 = tpu.matmul %23, %22, %cst_20 {dimension_numbers = #tpu.dot_dimension_numbers<[1], [0], [0], [1], [0, 0, 1, 1], [], []>} : vector<24x32xf32>, vector<32x256xf32>, vector<24x256xf32> -> vector<24x256xf32>
    %25 = vector.extract_strided_slice %24 {offsets = [0, 0], sizes = [8, 256], strides = [1, 1]} : vector<24x256xf32> to vector<8x256xf32>
    %c0_21 = arith.constant 0 : index
    %c0_22 = arith.constant 0 : index
    %c0_23 = arith.constant 0 : index
    %26 = vector.load %arg5[%c0_21, %c0_22, %c0_23] : memref<3x256x32xf32, #tpu.memory_space<vmem>>, vector<1x256x32xf32>
    %27 = vector.shape_cast %26 : vector<1x256x32xf32> to vector<256x32xf32>
    %cst_24 = arith.constant dense<0.000000e+00> : vector<8x32xf32>
    %28 = tpu.matmul %25, %27, %cst_24 {dimension_numbers = #tpu.dot_dimension_numbers<[1], [0], [0], [1], [0, 0, 1, 1], [], []>} : vector<8x256xf32>, vector<256x32xf32>, vector<8x32xf32> -> vector<8x32xf32>
    %29 = vector.extract_strided_slice %24 {offsets = [8, 0], sizes = [8, 256], strides = [1, 1]} : vector<24x256xf32> to vector<8x256xf32>
    %c1_25 = arith.constant 1 : index
    %c0_26 = arith.constant 0 : index
    %c0_27 = arith.constant 0 : index
    %30 = vector.load %arg5[%c1_25, %c0_26, %c0_27] : memref<3x256x32xf32, #tpu.memory_space<vmem>>, vector<1x256x32xf32>
    %31 = vector.shape_cast %30 : vector<1x256x32xf32> to vector<256x32xf32>
    %cst_28 = arith.constant dense<0.000000e+00> : vector<8x32xf32>
    %32 = tpu.matmul %29, %31, %cst_28 {dimension_numbers = #tpu.dot_dimension_numbers<[1], [0], [0], [1], [0, 0, 1, 1], [], []>} : vector<8x256xf32>, vector<256x32xf32>, vector<8x32xf32> -> vector<8x32xf32>
    %33 = arith.addf %28, %32 : vector<8x32xf32>
    %34 = vector.extract_strided_slice %24 {offsets = [16, 0], sizes = [8, 256], strides = [1, 1]} : vector<24x256xf32> to vector<8x256xf32>
    %c2_29 = arith.constant 2 : index
    %c0_30 = arith.constant 0 : index
    %c0_31 = arith.constant 0 : index
    %35 = vector.load %arg5[%c2_29, %c0_30, %c0_31] : memref<3x256x32xf32, #tpu.memory_space<vmem>>, vector<1x256x32xf32>
    %36 = vector.shape_cast %35 : vector<1x256x32xf32> to vector<256x32xf32>
    %cst_32 = arith.constant dense<0.000000e+00> : vector<8x32xf32>
    %37 = tpu.matmul %34, %36, %cst_32 {dimension_numbers = #tpu.dot_dimension_numbers<[1], [0], [0], [1], [0, 0, 1, 1], [], []>} : vector<8x256xf32>, vector<256x32xf32>, vector<8x32xf32> -> vector<8x32xf32>
    %38 = arith.addf %33, %37 : vector<8x32xf32>
    %39 = math.tanh %38 : vector<8x32xf32>
    %c0_33 = arith.constant 0 : index
    %c0_34 = arith.constant 0 : index
    %40 = vector.load %arg6[%c0_33, %c0_34] : memref<8x32xf32, #tpu.memory_space<vmem>>, vector<8x32xf32>
    tpu.vector_store %arg6[%c0_33, %c0_34], %39 {strides = array<i32>} : memref<8x32xf32, #tpu.memory_space<vmem>>, vector<8x32xf32>,
    return
  }
}

</mosaic_0001>

<bundles_post_ra>
// kernel: caus_cnn_block.1
= control target key start
LH: loop header
LB: loop body
LE: loop exit
PB: predicated region body
PF: predicated region fallthrough
CT: control target
= control target key end

     0   :  { %v2017_v3 = vmov 0.0   ;;  %vm59_vm0 = vcmask 785408   ;;  %vm922_vm1 = vcmask 261120   ;;  %s3137_s3 = inlined_call_operand.vmem [shape: f32[96,256], index: 3, kind: input, shape index: {}]   ;;  %s3138_s0 = inlined_call_operand.vmem [shape: f32[96,96], index: 0, kind: input, shape index: {}]   ;;  %s3139_s4 = inlined_call_operand.vmem [shape: f32[3,256,256], index: 4, kind: input, shape index: {}]   ;;  %s3140_s1 = inlined_call_operand.vmem [shape: f32[96,96], index: 1, kind: input, shape index: {}]   ;;  %s3141_s5 = inlined_call_operand.vmem [shape: f32[3,256,32], index: 5, kind: input, shape index: {}]   ;;  %s3142_s2 = inlined_call_operand.vmem [shape: f32[24,32], index: 2, kind: input, shape index: {}]   ;;  %s3143_s6 = inlined_call_operand.vmem [shape: f32[8,32], index: 6, kind: output, shape index: {}]  }
   0x1   :  { %v36_v0 = vld [vmem:[%s3137_s3 + $0x8] sm:$0xff]  ;;  %v38_v1 = vld [vmem:[%s3137_s3 + $0x18] sm:$0xff]  ;;  %v35_v2 = vld [vmem:[%s3137_s3] sm:$0xff]  ;;  %160 = vmatprep.mubr.f32.mxu0 %v2017_v3  ;;  %369 = vmatprep.mubr.f32.mxu1 %v2017_v3 }
   0x2   :  { %v1654_v4 = vpack.c.bf16 %v38_v1, %v36_v0  ;;  %v37_v5 = vld [vmem:[%s3137_s3 + $0x10] sm:$0xff]  ;;  %v40_v6 = vld [vmem:[%s3137_s3 + $0x28] sm:$0xff]  ;;  %v42_v7 = vld [vmem:[%s3137_s3 + $0x38] sm:$0xff] }
   0x3   :  { %v1656_v8 = vpack.c.bf16 %v37_v5, %v35_v2  ;;  %v1658_v9 = vpack.c.bf16 %v42_v7, %v40_v6  ;;  %v39_v10 = vld [vmem:[%s3137_s3 + $0x20] sm:$0xff]  ;;  %v41_v11 = vld [vmem:[%s3137_s3 + $0x30] sm:$0xff]  ;;  %v44_v12 = vld [vmem:[%s3137_s3 + $0x48] sm:$0xff] }
   0x4   :  { %1655 = vmatprep.subr.bf16.mxu0 %v1654_v4  ;;  %v46_v13 = vld [vmem:[%s3137_s3 + $0x58] sm:$0xff]  ;;  %v1660_v14 = vpack.c.bf16 %v41_v11, %v39_v10  ;;  %v43_v16 = vld [vmem:[%s3137_s3 + $0x40] sm:$0xff]  ;;  %v45_v17 = vld [vmem:[%s3137_s3 + $0x50] sm:$0xff] }
   0x5   :  { %1657 = vmatpush1.bf16.msra.mxu0 %v1656_v8  ;;  %v1662_v15 = vpack.c.bf16 %v46_v13, %v44_v12  ;;  %v48_v18 = vld [vmem:[%s3137_s3 + $0x68] sm:$0xff]  ;;  %v50_v19 = vld [vmem:[%s3137_s3 + $0x78] sm:$0xff]  ;;  %v1664_v20 = vpack.c.bf16 %v45_v17, %v43_v16  ;;  %v47_v22 = vld [vmem:[%s3137_s3 + $0x60] sm:$0xff] }
   0x6   :  { %1659 = vmatprep.subr.bf16.mxu0 %v1658_v9  ;;  %v1666_v21 = vpack.c.bf16 %v50_v19, %v48_v18  ;;  %v49_v23 = vld [vmem:[%s3137_s3 + $0x70] sm:$0xff]  ;;  %v52_v24 = vld [vmem:[%s3137_s3 + $0x88] sm:$0xff]  ;;  %v54_v25 = vld [vmem:[%s3137_s3 + $0x98] sm:$0xff] }
   0x7   :  { %v1668_v26 = vpack.c.bf16 %v49_v23, %v47_v22  ;;  %v1670_v27 = vpack.c.bf16 %v54_v25, %v52_v24  ;;  %v51_v28 = vld [vmem:[%s3137_s3 + $0x80] sm:$0xff]  ;;  %v53_v29 = vld [vmem:[%s3137_s3 + $0x90] sm:$0xff]  ;;  %v56_v30 = vld [vmem:[%s3137_s3 + $0xa8] sm:$0xff] }
   0x8   :  { %v58_v31 = vld [vmem:[%s3137_s3 + $0xb8] sm:$0xff]  ;;  %v1672_v32 = vpack.c.bf16 %v53_v29, %v51_v28  ;;  %v55_v34 = vld [vmem:[%s3137_s3 + $0xa0] sm:$0xff]  ;;  %v57_v35 = vld [vmem:[%s3137_s3 + $0xb0] sm:$0xff] }
   0x9   :  { %1661 = vmatpush1.bf16.msra.mxu0 %v1660_v14  ;;  %v1674_v33 = vpack.c.bf16 %v58_v31, %v56_v30  ;;  %v1676_v36 = vpack.c.bf16 %v57_v35, %v55_v34  ;;  %v23_v37 = vld [vmem:[%s3138_s0] sm:$0xff]  ;;  %v24_v38 = vld [vmem:[%s3138_s0 + $0x8] sm:$0xff]  ;;  %v25_v39 = vld [vmem:[%s3138_s0 + $0x10] sm:$0xff] }
   0xa   :  { %1663 = vmatprep.subr.bf16.mxu0 %v1662_v15  ;;  %v26_v40 = vld [vmem:[%s3138_s0 + $0x18] sm:$0xff]  ;;  %v27_v41 = vld [vmem:[%s3138_s0 + $0x20] sm:$0xff]  ;;  %v28_v42 = vld [vmem:[%s3138_s0 + $0x28] sm:$0xff] }
   0xb   :  { %v29_v43 = vld [vmem:[%s3138_s0 + $0x30] sm:$0xff]  ;;  %v30_v44 = vld [vmem:[%s3138_s0 + $0x38] sm:$0xff]  ;;  %v31_v45 = vld [vmem:[%s3138_s0 + $0x40] sm:$0xff] }
   0xc   :  { %v32_v46 = vld [vmem:[%s3138_s0 + $0x48] sm:$0xff]  ;;  %v33_v47 = vld [vmem:[%s3138_s0 + $0x50] sm:$0xff]  ;;  %v34_v48 = vld [vmem:[%s3138_s0 + $0x58] sm:$0xff] }
   0xd   :  { %1665 = vmatpush1.bf16.msra.mxu0 %v1664_v20  ;;  %v443_v49 = vld [vmem:[%s3139_s4 + $0x8] sm:$0xff]  ;;  %v445_v50 = vld [vmem:[%s3139_s4 + $0x18] sm:$0xff]  ;;  %v442_v51 = vld [vmem:[%s3139_s4] sm:$0xff] }
   0xe   :  { %1667 = vmatprep.subr.bf16.mxu0 %v1666_v21  ;;  %v1766_v52 = vpack.c.bf16 %v445_v50, %v443_v49  ;;  %v444_v53 = vld [vmem:[%s3139_s4 + $0x10] sm:$0xff]  ;;  %v447_v54 = vld [vmem:[%s3139_s4 + $0x28] sm:$0xff]  ;;  %v449_v55 = vld [vmem:[%s3139_s4 + $0x38] sm:$0xff] }
   0xf   :  { %v1768_v56 = vpack.c.bf16 %v444_v53, %v442_v51  ;;  %v1770_v57 = vpack.c.bf16 %v449_v55, %v447_v54  ;;  %v446_v58 = vld [vmem:[%s3139_s4 + $0x20] sm:$0xff]  ;;  %v448_v59 = vld [vmem:[%s3139_s4 + $0x30] sm:$0xff]  ;;  %v451_v60 = vld [vmem:[%s3139_s4 + $0x48] sm:$0xff] }
  0x10   :  { %v453_v61 = vld [vmem:[%s3139_s4 + $0x58] sm:$0xff]  ;;  %v1772_v62 = vpack.c.bf16 %v448_v59, %v446_v58  ;;  %v450_v0 = vld [vmem:[%s3139_s4 + $0x40] sm:$0xff]  ;;  %v452_v1 = vld [vmem:[%s3139_s4 + $0x50] sm:$0xff] }
  0x11   :  { %1669 = vmatpush1.bf16.msra.mxu0 %v1668_v26  ;;  %v1774_v63 = vpack.c.bf16 %v453_v61, %v451_v60  ;;  %v455_v2 = vld [vmem:[%s3139_s4 + $0x68] sm:$0xff]  ;;  %v457_v4 = vld [vmem:[%s3139_s4 + $0x78] sm:$0xff]  ;;  %v1776_v5 = vpack.c.bf16 %v452_v1, %v450_v0  ;;  %v454_v7 = vld [vmem:[%s3139_s4 + $0x60] sm:$0xff] }
  0x12   :  { %1671 = vmatprep.subr.bf16.mxu0 %v1670_v27  ;;  %v1778_v6 = vpack.c.bf16 %v457_v4, %v455_v2  ;;  %v456_v8 = vld [vmem:[%s3139_s4 + $0x70] sm:$0xff]  ;;  %v459_v9 = vld [vmem:[%s3139_s4 + $0x88] sm:$0xff]  ;;  %v461_v10 = vld [vmem:[%s3139_s4 + $0x98] sm:$0xff] }
  0x13   :  { %v1780_v11 = vpack.c.bf16 %v456_v8, %v454_v7  ;;  %v1782_v12 = vpack.c.bf16 %v461_v10, %v459_v9  ;;  %v458_v13 = vld [vmem:[%s3139_s4 + $0x80] sm:$0xff]  ;;  %v460_v14 = vld [vmem:[%s3139_s4 + $0x90] sm:$0xff]  ;;  %v463_v15 = vld [vmem:[%s3139_s4 + $0xa8] sm:$0xff] }
  0x14   :  { %v465_v16 = vld [vmem:[%s3139_s4 + $0xb8] sm:$0xff]  ;;  %v1784_v17 = vpack.c.bf16 %v460_v14, %v458_v13  ;;  %v462_v19 = vld [vmem:[%s3139_s4 + $0xa0] sm:$0xff]  ;;  %v464_v20 = vld [vmem:[%s3139_s4 + $0xb0] sm:$0xff] }
  0x15   :  { %1673 = vmatpush1.bf16.msra.mxu0 %v1672_v32  ;;  %v1786_v18 = vpack.c.bf16 %v465_v16, %v463_v15  ;;  %v467_v21 = vld [vmem:[%s3139_s4 + $0xc8] sm:$0xff]  ;;  %v469_v22 = vld [vmem:[%s3139_s4 + $0xd8] sm:$0xff]  ;;  %v1788_v23 = vpack.c.bf16 %v464_v20, %v462_v19  ;;  %v466_v25 = vld [vmem:[%s3139_s4 + $0xc0] sm:$0xff] }
  0x16   :  { %1675 = vmatprep.subr.bf16.mxu0 %v1674_v33  ;;  %v1790_v24 = vpack.c.bf16 %v469_v22, %v467_v21  ;;  %v468_v26 = vld [vmem:[%s3139_s4 + $0xd0] sm:$0xff]  ;;  %v471_v27 = vld [vmem:[%s3139_s4 + $0xe8] sm:$0xff]  ;;  %v473_v28 = vld [vmem:[%s3139_s4 + $0xf8] sm:$0xff] }
  0x17   :  { %v1792_v29 = vpack.c.bf16 %v468_v26, %v466_v25  ;;  %v1794_v30 = vpack.c.bf16 %v473_v28, %v471_v27  ;;  %v470_v31 = vld [vmem:[%s3139_s4 + $0xe0] sm:$0xff]  ;;  %v472_v32 = vld [vmem:[%s3139_s4 + $0xf0] sm:$0xff]  ;;  %v475_v33 = vld [vmem:[%s3139_s4 + $0x108] sm:$0xff] }
  0x18   :  { %v477_v34 = vld [vmem:[%s3139_s4 + $0x118] sm:$0xff]  ;;  %v1796_v35 = vpack.c.bf16 %v472_v32, %v470_v31  ;;  %v483_v51 = vld [vmem:[%s3139_s4 + $0x148] sm:$0xff]  ;;  %v482_v60 = vld [vmem:[%s3139_s4 + $0x140] sm:$0xff] }
  0x19   :  { %1677 = vmatpush1.bf16.msra.mxu0 %v1676_v36  ;;  %v484_v61 = vld [vmem:[%s3139_s4 + $0x150] sm:$0xff]  ;;  %v489_v0 = vld [vmem:[%s3139_s4 + $0x178] sm:$0xff]  ;;  %v491_v10 = vld [vmem:[%s3139_s4 + $0x188] sm:$0xff] }
  0x1a   :  { %1767 = vmatprep.subr.bf16.mxu0 %v1766_v52  ;;  %v485_v52 = vld [vmem:[%s3139_s4 + $0x158] sm:$0xff]  ;;  %v1808_v1 = vpack.c.bf16 %v484_v61, %v482_v60  ;;  %v490_v19 = vld [vmem:[%s3139_s4 + $0x180] sm:$0xff]  ;;  %v492_v20 = vld [vmem:[%s3139_s4 + $0x190] sm:$0xff] }
  0x1b   :  { %v1806_v59 = vpack.c.bf16 %v485_v52, %v483_v51  ;;  %v495_v22 = vld [vmem:[%s3139_s4 + $0x1a8] sm:$0xff]  ;;  %v494_v27 = vld [vmem:[%s3139_s4 + $0x1a0] sm:$0xff]  ;;  %v496_v28 = vld [vmem:[%s3139_s4 + $0x1b0] sm:$0xff] }
  0x1c   :  { %1330 = vmatmul.mubr.msk.f32.vlgmr.msra.gmra.mrb[0].mxu0 %vm59_vm0, %v23_v37  ;;  %v1798_v37 = vpack.c.bf16 %v477_v34, %v475_v33  ;;  %v499_v32 = vld [vmem:[%s3139_s4 + $0x1c8] sm:$0xff]  ;;  %v501_v33 = vld [vmem:[%s3139_s4 + $0x1d8] sm:$0xff] }
  0x1d   :  { %166 = vmatprep.mubr.f32.mxu0 %v2017_v3  ;;  %1769 = vmatpush1.bf16.msra.mxu0 %v1768_v56 }
  0x1e   :  { %1771 = vmatprep.subr.bf16.mxu0 %v1770_v57 }
  0x20   :  { %1331 = vmatmul.mubr.msk.f32.gmra.mrb[2].mxu0 %vm59_vm0, %v24_v38  ;;  %v474_v38 = vld [vmem:[%s3139_s4 + $0x100] sm:$0xff] }
  0x21   :  { %172 = vmatprep.mubr.f32.mxu0 %v2017_v3  ;;  %1773 = vmatpush1.bf16.msra.mxu0 %v1772_v62 }
  0x22   :  { %1775 = vmatprep.subr.bf16.mxu0 %v1774_v63  ;;  %v487_v63 = vld [vmem:[%s3139_s4 + $0x168] sm:$0xff] }
  0x23   :  { %v1810_v4 = vpack.c.bf16 %v489_v0, %v487_v63 }
  0x24   :  { %1332 = vmatmul.mubr.msk.f32.gmra.mrb[4].mxu0 %vm59_vm0, %v25_v39  ;;  %v476_v39 = vld [vmem:[%s3139_s4 + $0x110] sm:$0xff] }
  0x25   :  { %178 = vmatprep.mubr.f32.mxu0 %v2017_v3  ;;  %1777 = vmatpush1.bf16.msra.mxu0 %v1776_v5  ;;  %v486_v5 = vld [vmem:[%s3139_s4 + $0x160] sm:$0xff] }
  0x26   :  { %1779 = vmatprep.subr.bf16.mxu0 %v1778_v6  ;;  %v488_v6 = vld [vmem:[%s3139_s4 + $0x170] sm:$0xff] }
  0x27   :  { %v1812_v15 = vpack.c.bf16 %v488_v6, %v486_v5 }
  0x28   :  { %1333 = vmatmul.mubr.msk.f32.gmra.mrb[6].mxu0 %vm59_vm0, %v26_v40 }
  0x29   :  { %184 = vmatprep.mubr.f32.mxu0 %v2017_v3  ;;  %1781 = vmatpush1.bf16.msra.mxu0 %v1780_v11  ;;  %v493_v11 = vld [vmem:[%s3139_s4 + $0x198] sm:$0xff] }
  0x2a   :  { %1783 = vmatprep.subr.bf16.mxu0 %v1782_v12 }
  0x2c   :  { %1334 = vmatmul.mubr.msk.f32.gmra.mrb[8].mxu0 %vm59_vm0, %v27_v41  ;;  %v479_v41 = vld [vmem:[%s3139_s4 + $0x128] sm:$0xff] }
  0x2d   :  { %190 = vmatprep.mubr.f32.mxu0 %v2017_v3  ;;  %1785 = vmatpush1.bf16.msra.mxu0 %v1784_v17 }
  0x2e   :  { %1787 = vmatprep.subr.bf16.mxu0 %v1786_v18  ;;  %v1814_v18 = vpack.c.bf16 %v493_v11, %v491_v10 }
  0x30   :  { %1335 = vmatmul.mubr.msk.f32.gmra.mrb[10].mxu0 %vm59_vm0, %v28_v42  ;;  %v481_v42 = vld [vmem:[%s3139_s4 + $0x138] sm:$0xff] }
  0x31   :  { %196 = vmatprep.mubr.f32.mxu0 %v2017_v3  ;;  %1789 = vmatpush1.bf16.msra.mxu0 %v1788_v23  ;;  %v497_v23 = vld [vmem:[%s3139_s4 + $0x1b8] sm:$0xff] }
  0x32   :  { %1791 = vmatprep.subr.bf16.mxu0 %v1790_v24  ;;  %v1816_v24 = vpack.c.bf16 %v492_v20, %v490_v19  ;;  %v1818_v26 = vpack.c.bf16 %v497_v23, %v495_v22  ;;  %v1354_v19 = vld [vmem:[%s3139_s4 + $0x200] sm:$0xff]  ;;  %v1356_v20 = vld [vmem:[%s3139_s4 + $0x210] sm:$0xff]  ;;  %v1361_v22 = vld [vmem:[%s3139_s4 + $0x238] sm:$0xff] }
  0x33   :  { %v257_v23 = vld [vmem:[%s3140_s1] sm:$0xff] }
  0x34   :  { %1336 = vmatmul.mubr.msk.f32.gmra.mrb[12].mxu0 %vm59_vm0, %v29_v43  ;;  %v1800_v43 = vpack.c.bf16 %v476_v39, %v474_v38 }
  0x35   :  { %202 = vmatprep.mubr.f32.mxu0 %v2017_v3  ;;  %1793 = vmatpush1.bf16.msra.mxu0 %v1792_v29 }
  0x36   :  { %1795 = vmatprep.subr.bf16.mxu0 %v1794_v30 }
  0x38   :  { %1337 = vmatmul.mubr.msk.f32.gmra.mrb[14].mxu0 %vm59_vm0, %v30_v44 }
  0x39   :  { %208 = vmatprep.mubr.f32.mxu0 %v2017_v3  ;;  %1797 = vmatpush1.bf16.msra.mxu0 %v1796_v35 }
  0x3a   :  { %1799 = vmatprep.subr.bf16.mxu0 %v1798_v37  ;;  %v1820_v37 = vpack.c.bf16 %v496_v28, %v494_v27  ;;  %v1360_v27 = vld [vmem:[%s3139_s4 + $0x230] sm:$0xff]  ;;  %v1363_v28 = vld [vmem:[%s3139_s4 + $0x248] sm:$0xff] }
  0x3c   :  { %1338 = vmatmul.mubr.msk.f32.gmra.mrb[16].mxu0 %vm59_vm0, %v31_v45  ;;  %v1802_v45 = vpack.c.bf16 %v481_v42, %v479_v41  ;;  %v498_v41 = vld [vmem:[%s3139_s4 + $0x1c0] sm:$0xff]  ;;  %v500_v42 = vld [vmem:[%s3139_s4 + $0x1d0] sm:$0xff] }
  0x3d   :  { %214 = vmatprep.mubr.f32.mxu0 %v2017_v3  ;;  %1801 = vmatpush1.bf16.msra.mxu0 %v1800_v43 }
  0x3e   :  { %1803 = vmatprep.subr.bf16.mxu0 %v1802_v45  ;;  %v505_v45 = vld [vmem:[%s3139_s4 + $0x1f8] sm:$0xff] }
  0x40   :  { %1339 = vmatmul.mubr.msk.f32.gmra.mrb[18].mxu0 %vm59_vm0, %v32_v46  ;;  %v478_v46 = vld [vmem:[%s3139_s4 + $0x120] sm:$0xff] }
  0x41   :  { %220 = vmatprep.mubr.f32.mxu0 %v2017_v3 }
  0x44   :  { %1340 = vmatmul.mubr.msk.f32.gmra.mrb[20].mxu0 %vm59_vm0, %v33_v47  ;;  %v480_v47 = vld [vmem:[%s3139_s4 + $0x130] sm:$0xff] }
  0x45   :  { %226 = vmatprep.mubr.f32.mxu0 %v2017_v3  ;;  %v1804_v56 = vpack.c.bf16 %v480_v47, %v478_v46  ;;  %v1824_v46 = vpack.c.bf16 %v500_v42, %v498_v41  ;;  %v1368_v41 = vld [vmem:[%s3139_s4 + $0x270] sm:$0xff]  ;;  %v1371_v42 = vld [vmem:[%s3139_s4 + $0x288] sm:$0xff] }
  0x47   :  { %1805 = vmatpush1.bf16.msra.mxu0 %v1804_v56 }
  0x48   :  { %1341 = vmatmul.mubr.msk.f32.gmra.mrb[22].mxu0 %vm59_vm0, %v34_v48  ;;  %1807 = vmatprep.subr.bf16.mxu0 %v1806_v59 }
  0x4b   :  { %1809 = vmatpush1.bf16.msra.mxu0 %v1808_v1 }
  0x4c   :  { %1811 = vmatprep.subr.bf16.mxu0 %v1810_v4 }
  0x4f   :  { %1813 = vmatpush1.bf16.msra.mxu0 %v1812_v15 }
  0x50   :  { %1815 = vmatprep.subr.bf16.mxu0 %v1814_v18 }
  0x53   :  { %1817 = vmatpush1.bf16.msra.mxu0 %v1816_v24  ;;  %v1704_v24 = vpack.c.bf16 %v1356_v20, %v1354_v19  ;;  %v1386_v19 = vld [vmem:[%s3139_s4 + $0x300] sm:$0xff]  ;;  %v1388_v20 = vld [vmem:[%s3139_s4 + $0x310] sm:$0xff] }
  0x54   :  { %1819 = vmatprep.subr.bf16.mxu0 %v1818_v26  ;;  %v1358_v26 = vld [vmem:[%s3139_s4 + $0x220] sm:$0xff] }
  0x57   :  { %1821 = vmatpush1.bf16.msra.mxu0 %v1820_v37  ;;  %v259_v37 = vld [vmem:[%s3140_s1 + $0x10] sm:$0xff] }
  0xef   :  { %v162_v36 = vpop.f32.mrb[0].mxu0 }
  0xf0   :  { %v164_v40 = vpop.f32.mrb[1].mxu0  ;;  %v233_v48 = vmax.f32 %v162_v36, 0.0 }
  0xf1   :  { %v234_v53 = vmax.f32 %v164_v40, 0.0  ;;  %v1822_v40 = vpack.c.bf16 %v501_v33, %v499_v32  ;;  %v1362_v33 = vld [vmem:[%s3139_s4 + $0x240] sm:$0xff] }
  0xf3   :  { %v168_v44 = vpop.f32.mrb[2].mxu0  ;;  %1823 = vmatprep.subr.bf16.mxu0 %v1822_v40  ;;  %v1366_v40 = vld [vmem:[%s3139_s4 + $0x260] sm:$0xff] }
  0xf4   :  { %v235_v49 = vmax.f32 %v168_v44, 0.0  ;;  %v170_v50 = vpop.f32.mrb[3].mxu0  ;;  %v503_v44 = vld [vmem:[%s3139_s4 + $0x1e8] sm:$0xff]  ;;  %1825 = vmatpush1.bf16.msra.mxu0 %v1824_v46 }
  0xf5   :  { %v236_v54 = vmax.f32 %v170_v50, 0.0  ;;  %v504_v50 = vld [vmem:[%s3139_s4 + $0x1f0] sm:$0xff] }
  0xf6   :  { %v1680_v55 = vpack.c.bf16 %v235_v49, %v233_v48  ;;  %v1826_v48 = vpack.c.bf16 %v505_v45, %v503_v44  ;;  %v502_v49 = vld [vmem:[%s3139_s4 + $0x1e0] sm:$0xff]  ;;  %v260_v44 = vld [vmem:[%s3140_s1 + $0x18] sm:$0xff]  ;;  %v1716_v45 = vpack.c.bf16 %v1368_v41, %v1366_v40  ;;  %v1403_v40 = vld [vmem:[%s3139_s4 + $0x388] sm:$0xff] }
  0xf7   :  { %v174_v57 = vpop.f32.mrb[4].mxu0  ;;  %v1678_v58 = vpack.c.bf16 %v236_v54, %v234_v53  ;;  %v1405_v41 = vld [vmem:[%s3139_s4 + $0x398] sm:$0xff] }
  0xf8   :  { %v176_v62 = vpop.f32.mrb[5].mxu0  ;;  %v237_v7 = vmax.f32 %v174_v57, 0.0  ;;  %v1828_v57 = vpack.c.bf16 %v504_v50, %v502_v49  ;;  %1827 = vmatprep.subr.bf16.mxu0 %v1826_v48  ;;  %v262_v48 = vld [vmem:[%s3140_s1 + $0x28] sm:$0xff]  ;;  %v263_v49 = vld [vmem:[%s3140_s1 + $0x30] sm:$0xff]  ;;  %v264_v50 = vld [vmem:[%s3140_s1 + $0x38] sm:$0xff] }
  0xf9   :  { %1679 = vmatprep.subr.bf16.mxu1 %v1678_v58  ;;  %v238_v12 = vmax.f32 %v176_v62, 0.0 }
  0xfa   :  { %1681 = vmatpush1.bf16.msra.mxu1 %v1680_v55  ;;  %1829 = vmatpush1.bf16.msra.mxu0 %v1828_v57 }
  0xfb   :  { %v180_v2 = vpop.f32.mrb[6].mxu0 }
  0xfc   :  { %v239_v8 = vmax.f32 %v180_v2, 0.0  ;;  %v182_v9 = vpop.f32.mrb[7].mxu0 }
  0xfd   :  { %v240_v13 = vmax.f32 %v182_v9, 0.0 }
  0xfe   :  { %v1684_v14 = vpack.c.bf16 %v239_v8, %v237_v7 }
  0xff   :  { %v1682_v16 = vpack.c.bf16 %v240_v13, %v238_v12  ;;  %v186_v17 = vpop.f32.mrb[8].mxu0  ;;  %v1355_v12 = vld [vmem:[%s3139_s4 + $0x208] sm:$0xff]  ;;  %v1357_v13 = vld [vmem:[%s3139_s4 + $0x218] sm:$0xff] }
 0x100   :  { %v188_v21 = vpop.f32.mrb[9].mxu0  ;;  %v241_v29 = vmax.f32 %v186_v17, 0.0  ;;  %v1702_v18 = vpack.c.bf16 %v1357_v13, %v1355_v12  ;;  %v1382_v13 = vld [vmem:[%s3139_s4 + $0x2e0] sm:$0xff] }
 0x101   :  { %1683 = vmatprep.subr.bf16.mxu1 %v1682_v16  ;;  %v242_v34 = vmax.f32 %v188_v21, 0.0  ;;  %v1359_v21 = vld [vmem:[%s3139_s4 + $0x228] sm:$0xff] }
 0x102   :  { %1685 = vmatpush1.bf16.msra.mxu1 %v1684_v14 }
 0x103   :  { %v192_v25 = vpop.f32.mrb[10].mxu0 }
 0x104   :  { %v243_v30 = vmax.f32 %v192_v25, 0.0  ;;  %v194_v31 = vpop.f32.mrb[11].mxu0  ;;  %v1706_v25 = vpack.c.bf16 %v1361_v22, %v1359_v21  ;;  %v1736_v21 = vpack.c.bf16 %v1388_v20, %v1386_v19  ;;  %v1391_v22 = vld [vmem:[%s3139_s4 + $0x328] sm:$0xff]  ;;  %v1433_v20 = vld [vmem:[%s3139_s4 + $0x478] sm:$0xff] }
 0x105   :  { %v244_v35 = vmax.f32 %v194_v31, 0.0  ;;  %v1708_v31 = vpack.c.bf16 %v1360_v27, %v1358_v26  ;;  %v1392_v26 = vld [vmem:[%s3139_s4 + $0x330] sm:$0xff]  ;;  %v1431_v19 = vld [vmem:[%s3139_s4 + $0x468] sm:$0xff] }
 0x106   :  { %v1688_v36 = vpack.c.bf16 %v243_v30, %v241_v29  ;;  %v1365_v29 = vld [vmem:[%s3139_s4 + $0x258] sm:$0xff]  ;;  %v258_v30 = vld [vmem:[%s3140_s1 + $0x8] sm:$0xff] }
 0x107   :  { %v1686_v38 = vpack.c.bf16 %v244_v35, %v242_v34  ;;  %v198_v39 = vpop.f32.mrb[12].mxu0  ;;  %v1710_v32 = vpack.c.bf16 %v1365_v29, %v1363_v28  ;;  %v1364_v34 = vld [vmem:[%s3139_s4 + $0x250] sm:$0xff]  ;;  %v1367_v35 = vld [vmem:[%s3139_s4 + $0x268] sm:$0xff]  ;;  %v1397_v29 = vld [vmem:[%s3139_s4 + $0x358] sm:$0xff] }
 0x108   :  { %v200_v43 = vpop.f32.mrb[13].mxu0  ;;  %v245_v51 = vmax.f32 %v198_v39, 0.0  ;;  %v1395_v28 = vld [vmem:[%s3139_s4 + $0x348] sm:$0xff] }
 0x109   :  { %1687 = vmatprep.subr.bf16.mxu1 %v1686_v38  ;;  %v246_v54 = vmax.f32 %v200_v43, 0.0  ;;  %v1712_v38 = vpack.c.bf16 %v1364_v34, %v1362_v33  ;;  %v1373_v43 = vld [vmem:[%s3139_s4 + $0x298] sm:$0xff]  ;;  %v1399_v34 = vld [vmem:[%s3139_s4 + $0x368] sm:$0xff] }
 0x10a   :  { %1689 = vmatpush1.bf16.msra.mxu1 %v1688_v36  ;;  %v1369_v36 = vld [vmem:[%s3139_s4 + $0x278] sm:$0xff]  ;;  %v1718_v46 = vpack.c.bf16 %v1373_v43, %v1371_v42  ;;  %v1750_v42 = vpack.c.bf16 %v1405_v41, %v1403_v40  ;;  %v1402_v43 = vld [vmem:[%s3139_s4 + $0x380] sm:$0xff]  ;;  %v1440_v41 = vld [vmem:[%s3139_s4 + $0x4b0] sm:$0xff] }
 0x10b   :  { %v204_v47 = vpop.f32.mrb[14].mxu0  ;;  %v1714_v39 = vpack.c.bf16 %v1369_v36, %v1367_v35  ;;  %v1401_v35 = vld [vmem:[%s3139_s4 + $0x378] sm:$0xff]  ;;  %v1438_v40 = vld [vmem:[%s3139_s4 + $0x4a0] sm:$0xff] }
 0x10c   :  { %v247_v52 = vmax.f32 %v204_v47, 0.0  ;;  %v206_v53 = vpop.f32.mrb[15].mxu0  ;;  %v261_v47 = vld [vmem:[%s3140_s1 + $0x20] sm:$0xff]  ;;  %v1746_v36 = vpack.c.bf16 %v1401_v35, %v1399_v34  ;;  %v1439_v35 = vld [vmem:[%s3139_s4 + $0x4a8] sm:$0xff] }
 0x10d   :  { %v248_v55 = vmax.f32 %v206_v53, 0.0  ;;  %v267_v53 = vld [vmem:[%s3140_s1 + $0x50] sm:$0xff] }
 0x10e   :  { %v1692_v56 = vpack.c.bf16 %v247_v52, %v245_v51  ;;  %v265_v51 = vld [vmem:[%s3140_s1 + $0x40] sm:$0xff]  ;;  %v266_v52 = vld [vmem:[%s3140_s1 + $0x48] sm:$0xff] }
 0x10f   :  { %v1690_v58 = vpack.c.bf16 %v248_v55, %v246_v54  ;;  %v210_v59 = vpop.f32.mrb[16].mxu0  ;;  %v268_v54 = vld [vmem:[%s3140_s1 + $0x58] sm:$0xff]  ;;  %v1370_v55 = vld [vmem:[%s3139_s4 + $0x280] sm:$0xff] }
 0x110   :  { %v212_v60 = vpop.f32.mrb[17].mxu0  ;;  %v249_v62 = vmax.f32 %v210_v59, 0.0  ;;  %v1421_v59 = vld [vmem:[%s3139_s4 + $0x418] sm:$0xff] }
 0x111   :  { %1691 = vmatprep.subr.bf16.mxu1 %v1690_v58  ;;  %v250_v1 = vmax.f32 %v212_v60, 0.0  ;;  %v1419_v58 = vld [vmem:[%s3139_s4 + $0x408] sm:$0xff] }
 0x112   :  { %1693 = vmatpush1.bf16.msra.mxu1 %v1692_v56  ;;  %v1372_v56 = vld [vmem:[%s3139_s4 + $0x290] sm:$0xff]  ;;  %v1830_v60 = vpack.c.bf16 %v1421_v59, %v1419_v58  ;;  %v1415_v58 = vld [vmem:[%s3139_s4 + $0x3e8] sm:$0xff]  ;;  %v1417_v59 = vld [vmem:[%s3139_s4 + $0x3f8] sm:$0xff] }
 0x113   :  { %v216_v61 = vpop.f32.mrb[18].mxu0  ;;  %v1720_v57 = vpack.c.bf16 %v1372_v56, %v1370_v55  ;;  %v1410_v55 = vld [vmem:[%s3139_s4 + $0x3c0] sm:$0xff]  ;;  %v1412_v56 = vld [vmem:[%s3139_s4 + $0x3d0] sm:$0xff] }
 0x114   :  { %v251_v63 = vmax.f32 %v216_v61, 0.0  ;;  %v218_v0 = vpop.f32.mrb[19].mxu0  ;;  %v1375_v61 = vld [vmem:[%s3139_s4 + $0x2a8] sm:$0xff]  ;;  %1831 = vmatprep.subr.bf16.mxu0 %v1830_v60  ;;  %v1762_v60 = vpack.c.bf16 %v1417_v59, %v1415_v58 }
 0x115   :  { %v252_v2 = vmax.f32 %v218_v0, 0.0  ;;  %v1374_v0 = vld [vmem:[%s3139_s4 + $0x2a0] sm:$0xff]  ;;  %v1451_v59 = vld [vmem:[%s3139_s4 + $0x508] sm:$0xff] }
 0x116   :  { %v1696_v4 = vpack.c.bf16 %v251_v63, %v249_v62  ;;  %v1377_v62 = vld [vmem:[%s3139_s4 + $0x2b8] sm:$0xff] }
 0x117   :  { %v1694_v5 = vpack.c.bf16 %v252_v2, %v250_v1  ;;  %v222_v6 = vpop.f32.mrb[20].mxu0  ;;  %v1722_v63 = vpack.c.bf16 %v1377_v62, %v1375_v61  ;;  %v1376_v1 = vld [vmem:[%s3139_s4 + $0x2b0] sm:$0xff]  ;;  %v1414_v61 = vld [vmem:[%s3139_s4 + $0x3e0] sm:$0xff] }
 0x118   :  { %v224_v7 = vpop.f32.mrb[21].mxu0  ;;  %v253_v9 = vmax.f32 %v222_v6, 0.0  ;;  %v1724_v2 = vpack.c.bf16 %v1376_v1, %v1374_v0  ;;  %v1416_v62 = vld [vmem:[%s3139_s4 + $0x3f0] sm:$0xff]  ;;  %v1418_v0 = vld [vmem:[%s3139_s4 + $0x400] sm:$0xff] }
 0x119   :  { %1695 = vmatprep.subr.bf16.mxu1 %v1694_v5  ;;  %v254_v14 = vmax.f32 %v224_v7, 0.0  ;;  %v1381_v5 = vld [vmem:[%s3139_s4 + $0x2d8] sm:$0xff]  ;;  %v1378_v7 = vld [vmem:[%s3139_s4 + $0x2c0] sm:$0xff]  ;;  %v1420_v1 = vld [vmem:[%s3139_s4 + $0x410] sm:$0xff] }
 0x11a   :  { %1697 = vmatpush1.bf16.msra.mxu1 %v1696_v4  ;;  %v1379_v4 = vld [vmem:[%s3139_s4 + $0x2c8] sm:$0xff] }
 0x11b   :  { %v228_v8 = vpop.f32.mrb[22].mxu0  ;;  %v1726_v6 = vpack.c.bf16 %v1381_v5, %v1379_v4  ;;  %v1425_v4 = vld [vmem:[%s3139_s4 + $0x438] sm:$0xff] }
 0x11c   :  { %v255_v10 = vmax.f32 %v228_v8, 0.0  ;;  %v230_v11 = vpop.f32.mrb[23].mxu0  ;;  %v1380_v8 = vld [vmem:[%s3139_s4 + $0x2d0] sm:$0xff] }
 0x11d   :  { %v256_v15 = vmax.f32 %v230_v11, 0.0  ;;  %v1385_v11 = vld [vmem:[%s3139_s4 + $0x2f8] sm:$0xff] }
 0x11e   :  { %v1700_v16 = vpack.c.bf16 %v255_v10, %v253_v9  ;;  %v1728_v9 = vpack.c.bf16 %v1380_v8, %v1378_v7  ;;  %v1383_v10 = vld [vmem:[%s3139_s4 + $0x2e8] sm:$0xff] }
 0x11f   :  { %v1698_v17 = vpack.c.bf16 %v256_v15, %v254_v14  ;;  %v1730_v12 = vpack.c.bf16 %v1385_v11, %v1383_v10  ;;  %v1384_v14 = vld [vmem:[%s3139_s4 + $0x2f0] sm:$0xff]  ;;  %v1427_v11 = vld [vmem:[%s3139_s4 + $0x448] sm:$0xff] }
 0x120   :  { %v1732_v15 = vpack.c.bf16 %v1384_v14, %v1382_v13  ;;  %v1424_v10 = vld [vmem:[%s3139_s4 + $0x430] sm:$0xff] }
 0x121   :  { %1699 = vmatprep.subr.bf16.mxu1 %v1698_v17  ;;  %v1389_v17 = vld [vmem:[%s3139_s4 + $0x318] sm:$0xff] }
 0x122   :  { %1701 = vmatpush1.bf16.msra.mxu1 %v1700_v16  ;;  %v1387_v16 = vld [vmem:[%s3139_s4 + $0x308] sm:$0xff] }
 0x123   :  { %1703 = vmatprep.subr.bf16.mxu1 %v1702_v18  ;;  %v1734_v18 = vpack.c.bf16 %v1389_v17, %v1387_v16  ;;  %v1426_v16 = vld [vmem:[%s3139_s4 + $0x440] sm:$0xff]  ;;  %v1428_v17 = vld [vmem:[%s3139_s4 + $0x450] sm:$0xff] }
 0x125   :  { %1342 = vmatmul.mubr.msk.f32.vlgmr.msra.gmra.mrb[0].mxu1 %vm59_vm0, %v257_v23  ;;  %v1393_v23 = vld [vmem:[%s3139_s4 + $0x338] sm:$0xff] }
 0x126   :  { %375 = vmatprep.mubr.f32.mxu1 %v2017_v3  ;;  %1705 = vmatpush1.bf16.msra.mxu1 %v1704_v24  ;;  %v1738_v24 = vpack.c.bf16 %v1393_v23, %v1391_v22  ;;  %v1842_v23 = vpack.c.bf16 %v1433_v20, %v1431_v19  ;;  %v1463_v20 = vld [vmem:[%s3139_s4 + $0x568] sm:$0xff] }
 0x127   :  { %1707 = vmatprep.subr.bf16.mxu1 %v1706_v25  ;;  %v1390_v25 = vld [vmem:[%s3139_s4 + $0x320] sm:$0xff] }
 0x128   :  { %v1740_v27 = vpack.c.bf16 %v1392_v26, %v1390_v25  ;;  %v1432_v25 = vld [vmem:[%s3139_s4 + $0x470] sm:$0xff] }
 0x129   :  { %1343 = vmatmul.mubr.msk.f32.gmra.mrb[2].mxu1 %vm59_vm0, %v258_v30  ;;  %v1742_v30 = vpack.c.bf16 %v1397_v29, %v1395_v28  ;;  %v1437_v28 = vld [vmem:[%s3139_s4 + $0x498] sm:$0xff] }
 0x12a   :  { %381 = vmatprep.mubr.f32.mxu1 %v2017_v3  ;;  %1709 = vmatpush1.bf16.msra.mxu1 %v1708_v31  ;;  %v1394_v31 = vld [vmem:[%s3139_s4 + $0x340] sm:$0xff] }
 0x12b   :  { %1711 = vmatprep.subr.bf16.mxu1 %v1710_v32  ;;  %v1396_v32 = vld [vmem:[%s3139_s4 + $0x350] sm:$0xff] }
 0x12c   :  { %v1744_v33 = vpack.c.bf16 %v1396_v32, %v1394_v31  ;;  %v1434_v32 = vld [vmem:[%s3139_s4 + $0x480] sm:$0xff] }
 0x12d   :  { %1344 = vmatmul.mubr.msk.f32.gmra.mrb[4].mxu1 %vm59_vm0, %v259_v37  ;;  %v1398_v37 = vld [vmem:[%s3139_s4 + $0x360] sm:$0xff] }
 0x12e   :  { %387 = vmatprep.mubr.f32.mxu1 %v2017_v3  ;;  %1713 = vmatpush1.bf16.msra.mxu1 %v1712_v38  ;;  %v1400_v38 = vld [vmem:[%s3139_s4 + $0x370] sm:$0xff] }
 0x12f   :  { %1715 = vmatprep.subr.bf16.mxu1 %v1714_v39  ;;  %v1748_v39 = vpack.c.bf16 %v1400_v38, %v1398_v37 }
 0x131   :  { %1345 = vmatmul.mubr.msk.f32.gmra.mrb[6].mxu1 %vm59_vm0, %v260_v44  ;;  %v1404_v44 = vld [vmem:[%s3139_s4 + $0x390] sm:$0xff] }
 0x132   :  { %393 = vmatprep.mubr.f32.mxu1 %v2017_v3  ;;  %1717 = vmatpush1.bf16.msra.mxu1 %v1716_v45  ;;  %v1752_v45 = vpack.c.bf16 %v1404_v44, %v1402_v43  ;;  %v1443_v43 = vld [vmem:[%s3139_s4 + $0x4c8] sm:$0xff]  ;;  %v1445_v44 = vld [vmem:[%s3139_s4 + $0x4d8] sm:$0xff] }
 0x133   :  { %1719 = vmatprep.subr.bf16.mxu1 %v1718_v46  ;;  %v1407_v46 = vld [vmem:[%s3139_s4 + $0x3a8] sm:$0xff] }
 0x135   :  { %1346 = vmatmul.mubr.msk.f32.gmra.mrb[8].mxu1 %vm59_vm0, %v261_v47  ;;  %v1409_v47 = vld [vmem:[%s3139_s4 + $0x3b8] sm:$0xff] }
 0x136   :  { %399 = vmatprep.mubr.f32.mxu1 %v2017_v3  ;;  %1721 = vmatpush1.bf16.msra.mxu1 %v1720_v57  ;;  %v1760_v57 = vpack.c.bf16 %v1412_v56, %v1410_v55  ;;  %v1446_v56 = vld [vmem:[%s3139_s4 + $0x4e0] sm:$0xff] }
 0x137   :  { %1723 = vmatprep.subr.bf16.mxu1 %v1722_v63  ;;  %v1764_v63 = vpack.c.bf16 %v1416_v62, %v1414_v61 }
 0x139   :  { %1347 = vmatmul.mubr.msk.f32.gmra.mrb[10].mxu1 %vm59_vm0, %v262_v48  ;;  %v1754_v48 = vpack.c.bf16 %v1409_v47, %v1407_v46  ;;  %v1854_v47 = vpack.c.bf16 %v1445_v44, %v1443_v43  ;;  %v1477_v43 = vld [vmem:[%s3139_s4 + $0x5d8] sm:$0xff] }
 0x13a   :  { %405 = vmatprep.mubr.f32.mxu1 %v2017_v3  ;;  %1725 = vmatpush1.bf16.msra.mxu1 %v1724_v2  ;;  %v1423_v2 = vld [vmem:[%s3139_s4 + $0x428] sm:$0xff] }
 0x13b   :  { %1727 = vmatprep.subr.bf16.mxu1 %v1726_v6  ;;  %v1832_v6 = vpack.c.bf16 %v1420_v1, %v1418_v0  ;;  %v1834_v8 = vpack.c.bf16 %v1425_v4, %v1423_v2  ;;  %v1450_v0 = vld [vmem:[%s3139_s4 + $0x500] sm:$0xff]  ;;  %v1452_v1 = vld [vmem:[%s3139_s4 + $0x510] sm:$0xff]  ;;  %v1455_v4 = vld [vmem:[%s3139_s4 + $0x528] sm:$0xff] }
 0x13d   :  { %1348 = vmatmul.mubr.msk.f32.gmra.mrb[12].mxu1 %vm59_vm0, %v263_v49  ;;  %v1406_v49 = vld [vmem:[%s3139_s4 + $0x3a0] sm:$0xff] }
 0x13e   :  { %411 = vmatprep.mubr.f32.mxu1 %v2017_v3  ;;  %1729 = vmatpush1.bf16.msra.mxu1 %v1728_v9  ;;  %v1422_v9 = vld [vmem:[%s3139_s4 + $0x420] sm:$0xff] }
 0x13f   :  { %1731 = vmatprep.subr.bf16.mxu1 %v1730_v12  ;;  %v1429_v12 = vld [vmem:[%s3139_s4 + $0x458] sm:$0xff]  ;;  %v1836_v13 = vpack.c.bf16 %v1424_v10, %v1422_v9  ;;  %v1454_v9 = vld [vmem:[%s3139_s4 + $0x520] sm:$0xff]  ;;  %v1456_v10 = vld [vmem:[%s3139_s4 + $0x530] sm:$0xff] }
 0x141   :  { %1349 = vmatmul.mubr.msk.f32.gmra.mrb[14].mxu1 %vm59_vm0, %v264_v50  ;;  %v1408_v50 = vld [vmem:[%s3139_s4 + $0x3b0] sm:$0xff] }
 0x142   :  { %417 = vmatprep.mubr.f32.mxu1 %v2017_v3  ;;  %1733 = vmatpush1.bf16.msra.mxu1 %v1732_v15  ;;  %v1838_v15 = vpack.c.bf16 %v1429_v12, %v1427_v11  ;;  %v1459_v12 = vld [vmem:[%s3139_s4 + $0x548] sm:$0xff] }
 0x143   :  { %1735 = vmatprep.subr.bf16.mxu1 %v1734_v18 }
 0x145   :  { %1350 = vmatmul.mubr.msk.f32.gmra.mrb[16].mxu1 %vm59_vm0, %v265_v51  ;;  %v1756_v51 = vpack.c.bf16 %v1408_v50, %v1406_v49  ;;  %v1444_v49 = vld [vmem:[%s3139_s4 + $0x4d0] sm:$0xff] }
 0x146   :  { %423 = vmatprep.mubr.f32.mxu1 %v2017_v3  ;;  %1737 = vmatpush1.bf16.msra.mxu1 %v1736_v21  ;;  %v1840_v21 = vpack.c.bf16 %v1428_v17, %v1426_v16  ;;  %v1458_v17 = vld [vmem:[%s3139_s4 + $0x540] sm:$0xff] }
 0x147   :  { %1739 = vmatprep.subr.bf16.mxu1 %v1738_v24  ;;  %v1430_v24 = vld [vmem:[%s3139_s4 + $0x460] sm:$0xff] }
 0x148   :  { %v1844_v29 = vpack.c.bf16 %v1432_v25, %v1430_v24  ;;  %v1462_v25 = vld [vmem:[%s3139_s4 + $0x560] sm:$0xff] }
 0x149   :  { %1351 = vmatmul.mubr.msk.f32.gmra.mrb[18].mxu1 %vm59_vm0, %v266_v52  ;;  %v1411_v52 = vld [vmem:[%s3139_s4 + $0x3c8] sm:$0xff] }
 0x14a   :  { %429 = vmatprep.mubr.f32.mxu1 %v2017_v3  ;;  %1741 = vmatpush1.bf16.msra.mxu1 %v1740_v27  ;;  %v1435_v27 = vld [vmem:[%s3139_s4 + $0x488] sm:$0xff] }
 0x14b   :  { %1743 = vmatprep.subr.bf16.mxu1 %v1742_v30  ;;  %v1846_v31 = vpack.c.bf16 %v1437_v28, %v1435_v27  ;;  %v1467_v28 = vld [vmem:[%s3139_s4 + $0x588] sm:$0xff] }
 0x14d   :  { %1352 = vmatmul.mubr.msk.f32.gmra.mrb[20].mxu1 %vm59_vm0, %v267_v53  ;;  %v1413_v53 = vld [vmem:[%s3139_s4 + $0x3d8] sm:$0xff] }
 0x14e   :  { %435 = vmatprep.mubr.f32.mxu1 %v2017_v3  ;;  %1745 = vmatpush1.bf16.msra.mxu1 %v1744_v33  ;;  %v1436_v33 = vld [vmem:[%s3139_s4 + $0x490] sm:$0xff] }
 0x14f   :  { %1747 = vmatprep.subr.bf16.mxu1 %v1746_v36  ;;  %v1441_v36 = vld [vmem:[%s3139_s4 + $0x4b8] sm:$0xff]  ;;  %v1848_v37 = vpack.c.bf16 %v1436_v33, %v1434_v32  ;;  %v1466_v33 = vld [vmem:[%s3139_s4 + $0x580] sm:$0xff] }
 0x151   :  { %1353 = vmatmul.mubr.msk.f32.gmra.mrb[22].mxu1 %vm59_vm0, %v268_v54  ;;  %v1758_v54 = vpack.c.bf16 %v1413_v53, %v1411_v52  ;;  %v1449_v52 = vld [vmem:[%s3139_s4 + $0x4f8] sm:$0xff] }
 0x152   :  { %1749 = vmatpush1.bf16.msra.mxu1 %v1748_v39  ;;  %v1850_v39 = vpack.c.bf16 %v1441_v36, %v1439_v35  ;;  %v1471_v36 = vld [vmem:[%s3139_s4 + $0x5a8] sm:$0xff] }
 0x153   :  { %1751 = vmatprep.subr.bf16.mxu1 %v1750_v42 }
 0x156   :  { %1753 = vmatpush1.bf16.msra.mxu1 %v1752_v45  ;;  %v1852_v45 = vpack.c.bf16 %v1440_v41, %v1438_v40  ;;  %v1470_v40 = vld [vmem:[%s3139_s4 + $0x5a0] sm:$0xff]  ;;  %v1472_v41 = vld [vmem:[%s3139_s4 + $0x5b0] sm:$0xff] }
 0x157   :  { %1755 = vmatprep.subr.bf16.mxu1 %v1754_v48  ;;  %v1442_v48 = vld [vmem:[%s3139_s4 + $0x4c0] sm:$0xff]  ;;  %v1884_v44 = vpack.c.bf16 %v1472_v41, %v1470_v40 }
 0x158   :  { %v1856_v53 = vpack.c.bf16 %v1444_v49, %v1442_v48  ;;  %v1479_v48 = vld [vmem:[%s3139_s4 + $0x5e8] sm:$0xff]  ;;  %v1481_v49 = vld [vmem:[%s3139_s4 + $0x5f8] sm:$0xff] }
 0x15a   :  { %1757 = vmatpush1.bf16.msra.mxu1 %v1756_v51  ;;  %v1447_v51 = vld [vmem:[%s3139_s4 + $0x4e8] sm:$0xff] }
 0x15b   :  { %1759 = vmatprep.subr.bf16.mxu1 %v1758_v54  ;;  %v1858_v55 = vpack.c.bf16 %v1449_v52, %v1447_v51  ;;  %v1890_v51 = vpack.c.bf16 %v1481_v49, %v1479_v48  ;;  %v1478_v52 = vld [vmem:[%s3139_s4 + $0x5e0] sm:$0xff] }
 0x15e   :  { %1761 = vmatpush1.bf16.msra.mxu1 %v1760_v57  ;;  %v1448_v57 = vld [vmem:[%s3139_s4 + $0x4f0] sm:$0xff] }
 0x15f   :  { %1763 = vmatprep.subr.bf16.mxu1 %v1762_v60  ;;  %v1453_v60 = vld [vmem:[%s3139_s4 + $0x518] sm:$0xff]  ;;  %v1860_v61 = vpack.c.bf16 %v1448_v57, %v1446_v56  ;;  %v1502_v56 = vld [vmem:[%s3141_s5 + $0x188] sm:$0xff]  ;;  %v1485_v57 = vld [vmem:[%s3141_s5 + $0x100] sm:$0xff] }
 0x162   :  { %1765 = vmatpush1.bf16.msra.mxu1 %v1764_v63  ;;  %v1862_v63 = vpack.c.bf16 %v1453_v60, %v1451_v59  ;;  %v1486_v59 = vld [vmem:[%s3141_s5 + $0x108] sm:$0xff]  ;;  %v1503_v60 = vld [vmem:[%s3141_s5 + $0x190] sm:$0xff] }
 0x1f8   :  { %v371_v5 = vpop.f32.mrb[0].mxu1 }
 0x1f9   :  { %v373_v7 = vpop.f32.mrb[1].mxu1 }
 0x1fa   :  { %724 = vmatprep.mubr.f32.mxu0 %v373_v7 }
 0x1fb   :  { %725 = vmatmul.mubr.f32.vlgmr.msra.gmra.mrb[24].mxu0 %v371_v5  ;;  %v1457_v5 = vld [vmem:[%s3139_s4 + $0x538] sm:$0xff] }
 0x1fc   :  { %1833 = vmatpush1.bf16.msra.mxu0 %v1832_v6  ;;  %v377_v14 = vpop.f32.mrb[2].mxu1  ;;  %v1864_v6 = vpack.c.bf16 %v1452_v1, %v1450_v0  ;;  %v1487_v0 = vld [vmem:[%s3141_s5 + $0x110] sm:$0xff]  ;;  %v1488_v1 = vld [vmem:[%s3141_s5 + $0x118] sm:$0xff] }
 0x1fd   :  { %1835 = vmatprep.subr.bf16.mxu0 %v1834_v8  ;;  %v379_v18 = vpop.f32.mrb[3].mxu1  ;;  %v1866_v8 = vpack.c.bf16 %v1457_v5, %v1455_v4  ;;  %v1506_v4 = vld [vmem:[%s3141_s5 + $0x1a8] sm:$0xff]  ;;  %v1908_v5 = vpack.c.bf16 %v1488_v1, %v1487_v0 }
 0x1fe   :  { %730 = vmatprep.mubr.f32.mxu0 %v379_v18  ;;  %v1460_v18 = vld [vmem:[%s3139_s4 + $0x550] sm:$0xff] }
 0x1ff   :  { %731 = vmatmul.mubr.f32.gmra.mrb[26].mxu0 %v377_v14  ;;  %v1868_v14 = vpack.c.bf16 %v1456_v10, %v1454_v9  ;;  %v1507_v9 = vld [vmem:[%s3141_s5 + $0x1b0] sm:$0xff]  ;;  %v1508_v10 = vld [vmem:[%s3141_s5 + $0x1b8] sm:$0xff] }
 0x200   :  { %1837 = vmatpush1.bf16.msra.mxu0 %v1836_v13  ;;  %v383_v22 = vpop.f32.mrb[4].mxu1  ;;  %v1461_v13 = vld [vmem:[%s3139_s4 + $0x558] sm:$0xff] }
 0x201   :  { %1839 = vmatprep.subr.bf16.mxu0 %v1838_v15  ;;  %v385_v26 = vpop.f32.mrb[5].mxu1  ;;  %v1870_v16 = vpack.c.bf16 %v1461_v13, %v1459_v12  ;;  %v1914_v12 = vpack.c.bf16 %v1508_v10, %v1507_v9  ;;  %v1491_v13 = vld [vmem:[%s3141_s5 + $0x130] sm:$0xff] }
 0x202   :  { %736 = vmatprep.mubr.f32.mxu0 %v385_v26  ;;  %v1464_v26 = vld [vmem:[%s3139_s4 + $0x570] sm:$0xff] }
 0x203   :  { %737 = vmatmul.mubr.f32.gmra.mrb[28].mxu0 %v383_v22  ;;  %v1872_v22 = vpack.c.bf16 %v1460_v18, %v1458_v17  ;;  %v921_v9 = vld [vmem:[%s3142_s2 + $0x10] sm:$0xff] }
 0x204   :  { %1841 = vmatpush1.bf16.msra.mxu0 %v1840_v21  ;;  %v389_v30 = vpop.f32.mrb[6].mxu1  ;;  %v1465_v21 = vld [vmem:[%s3139_s4 + $0x578] sm:$0xff]  ;;  %v1515_v10 = vld [vmem:[%s3141_s5 + $0x1f0] sm:$0xff] }
 0x205   :  { %1843 = vmatprep.subr.bf16.mxu0 %v1842_v23  ;;  %v391_v34 = vpop.f32.mrb[7].mxu1  ;;  %v1874_v24 = vpack.c.bf16 %v1465_v21, %v1463_v20  ;;  %v1494_v20 = vld [vmem:[%s3141_s5 + $0x148] sm:$0xff]  ;;  %v1511_v21 = vld [vmem:[%s3141_s5 + $0x1d0] sm:$0xff] }
 0x206   :  { %742 = vmatprep.mubr.f32.mxu0 %v391_v34  ;;  %v1468_v34 = vld [vmem:[%s3139_s4 + $0x590] sm:$0xff] }
 0x207   :  { %743 = vmatmul.mubr.f32.gmra.mrb[30].mxu0 %v389_v30  ;;  %v1876_v30 = vpack.c.bf16 %v1464_v26, %v1462_v25  ;;  %v1495_v25 = vld [vmem:[%s3141_s5 + $0x150] sm:$0xff]  ;;  %v1496_v26 = vld [vmem:[%s3141_s5 + $0x158] sm:$0xff] }
 0x208   :  { %1845 = vmatpush1.bf16.msra.mxu0 %v1844_v29  ;;  %v395_v38 = vpop.f32.mrb[8].mxu1  ;;  %v1469_v29 = vld [vmem:[%s3139_s4 + $0x598] sm:$0xff] }
 0x209   :  { %1847 = vmatprep.subr.bf16.mxu0 %v1846_v31  ;;  %v397_v42 = vpop.f32.mrb[9].mxu1  ;;  %v1878_v32 = vpack.c.bf16 %v1469_v29, %v1467_v28  ;;  %v1514_v28 = vld [vmem:[%s3141_s5 + $0x1e8] sm:$0xff]  ;;  %v1924_v29 = vpack.c.bf16 %v1496_v26, %v1495_v25 }
 0x20a   :  { %635 = vmatprep.mubr.f32.mxu1 %v397_v42  ;;  %v1475_v42 = vld [vmem:[%s3139_s4 + $0x5c8] sm:$0xff] }
 0x20b   :  { %636 = vmatmul.mubr.f32.vlgmr.msra.gmra.mrb[24].mxu1 %v395_v38  ;;  %v1880_v38 = vpack.c.bf16 %v1468_v34, %v1466_v33 }
 0x20c   :  { %1849 = vmatpush1.bf16.msra.mxu0 %v1848_v37  ;;  %v401_v46 = vpop.f32.mrb[10].mxu1  ;;  %v1473_v37 = vld [vmem:[%s3139_s4 + $0x5b8] sm:$0xff] }
 0x20d   :  { %1851 = vmatprep.subr.bf16.mxu0 %v1850_v39  ;;  %v403_v50 = vpop.f32.mrb[11].mxu1  ;;  %v1882_v39 = vpack.c.bf16 %v1473_v37, %v1471_v36 }
 0x20e   :  { %641 = vmatprep.mubr.f32.mxu1 %v403_v50 }
 0x20f   :  { %642 = vmatmul.mubr.f32.gmra.mrb[26].mxu1 %v401_v46  ;;  %v1474_v46 = vld [vmem:[%s3139_s4 + $0x5c0] sm:$0xff] }
 0x210   :  { %1853 = vmatpush1.bf16.msra.mxu0 %v1852_v45  ;;  %v407_v54 = vpop.f32.mrb[12].mxu1  ;;  %v1886_v45 = vpack.c.bf16 %v1477_v43, %v1475_v42 }
 0x211   :  { %1855 = vmatprep.subr.bf16.mxu0 %v1854_v47  ;;  %v409_v58 = vpop.f32.mrb[13].mxu1  ;;  %v1476_v47 = vld [vmem:[%s3139_s4 + $0x5d0] sm:$0xff] }
 0x212   :  { %647 = vmatprep.mubr.f32.mxu1 %v409_v58  ;;  %v1888_v50 = vpack.c.bf16 %v1476_v47, %v1474_v46 }
 0x213   :  { %648 = vmatmul.mubr.f32.gmra.mrb[28].mxu1 %v407_v54 }
 0x214   :  { %1857 = vmatpush1.bf16.msra.mxu0 %v1856_v53  ;;  %v413_v62 = vpop.f32.mrb[14].mxu1  ;;  %v1480_v53 = vld [vmem:[%s3139_s4 + $0x5f0] sm:$0xff] }
 0x215   :  { %1859 = vmatprep.subr.bf16.mxu0 %v1858_v55  ;;  %v415_v2 = vpop.f32.mrb[15].mxu1  ;;  %v1892_v54 = vpack.c.bf16 %v1480_v53, %v1478_v52  ;;  %v1501_v55 = vld [vmem:[%s3141_s5 + $0x180] sm:$0xff] }
 0x216   :  { %653 = vmatprep.mubr.f32.mxu1 %v415_v2  ;;  %v1902_v58 = vpack.c.bf16 %v1502_v56, %v1501_v55  ;;  %v1505_v2 = vld [vmem:[%s3141_s5 + $0x1a0] sm:$0xff] }
 0x217   :  { %654 = vmatmul.mubr.f32.gmra.mrb[30].mxu1 %v413_v62  ;;  %v1904_v62 = vpack.c.bf16 %v1486_v59, %v1485_v57 }
 0x218   :  { %1861 = vmatpush1.bf16.msra.mxu0 %v1860_v61  ;;  %v2743_v7 = vpop.f32.mrb[16].mxu1  ;;  %v1504_v61 = vld [vmem:[%s3141_s5 + $0x198] sm:$0xff]  ;;  %1903 = vmatprep.subr.bf16.mxu1 %v1902_v58 }
 0x219   :  { %1863 = vmatprep.subr.bf16.mxu0 %v1862_v63  ;;  %v421_v11 = vpop.f32.mrb[17].mxu1  ;;  %v1906_v63 = vpack.c.bf16 %v1504_v61, %v1503_v60  ;;  %1905 = vmatpush3.bf16.msra.mxu1 %v1904_v62 }
 0x21a   :  { %878 = vmatprep.mubr.f32.mxu0 %v421_v11 }
 0x21b   :  { %1907 = vmatprep.subr.bf16.mxu1 %v1906_v63 }
 0x21c   :  { %1865 = vmatpush1.bf16.msra.mxu0 %v1864_v6  ;;  %v425_v15 = vpop.f32.mrb[18].mxu1  ;;  %v1910_v6 = vpack.c.bf16 %v1506_v4, %v1505_v2 }
 0x21d   :  { %1867 = vmatprep.subr.bf16.mxu0 %v1866_v8  ;;  %v427_v19 = vpop.f32.mrb[19].mxu1  ;;  %v1490_v8 = vld [vmem:[%s3141_s5 + $0x128] sm:$0xff]  ;;  %1909 = vmatpush3.bf16.msra.mxu1 %v1908_v5 }
 0x21e   :  { %1911 = vmatprep.subr.bf16.mxu1 %v1910_v6 }
 0x220   :  { %1869 = vmatpush1.bf16.msra.mxu0 %v1868_v14  ;;  %v431_v23 = vpop.f32.mrb[20].mxu1  ;;  %v1492_v14 = vld [vmem:[%s3141_s5 + $0x138] sm:$0xff] }
 0x221   :  { %1871 = vmatprep.subr.bf16.mxu0 %v1870_v16  ;;  %v433_v27 = vpop.f32.mrb[21].mxu1  ;;  %v1510_v16 = vld [vmem:[%s3141_s5 + $0x1c8] sm:$0xff]  ;;  %v1916_v17 = vpack.c.bf16 %v1492_v14, %v1491_v13  ;;  %v1499_v13 = vld [vmem:[%s3141_s5 + $0x170] sm:$0xff] }
 0x224   :  { %1873 = vmatpush1.bf16.msra.mxu0 %v1872_v22  ;;  %v437_v31 = vpop.f32.mrb[22].mxu1  ;;  %v1512_v22 = vld [vmem:[%s3141_s5 + $0x1d8] sm:$0xff] }
 0x225   :  { %1875 = vmatprep.subr.bf16.mxu0 %v1874_v24  ;;  %v439_v35 = vpop.f32.mrb[23].mxu1  ;;  %v1922_v24 = vpack.c.bf16 %v1512_v22, %v1511_v21  ;;  %v1016_v21 = vld [vmem:[%s3141_s5 + $0x8] sm:$0xff]  ;;  %v1033_v22 = vld [vmem:[%s3141_s5 + $0x90] sm:$0xff] }
 0x228   :  { %1877 = vmatpush1.bf16.msra.mxu0 %v1876_v30 }
 0x229   :  { %1879 = vmatprep.subr.bf16.mxu0 %v1878_v32  ;;  %v1498_v32 = vld [vmem:[%s3141_s5 + $0x168] sm:$0xff] }
 0x22c   :  { %1881 = vmatpush1.bf16.msra.mxu0 %v1880_v38 }
 0x22d   :  { %1883 = vmatprep.subr.bf16.mxu0 %v1882_v39 }
 0x230   :  { %1885 = vmatpush1.bf16.msra.mxu0 %v1884_v44 }
 0x231   :  { %1887 = vmatprep.subr.bf16.mxu0 %v1886_v45 }
 0x234   :  { %1889 = vmatpush1.bf16.msra.mxu0 %v1888_v50 }
 0x235   :  { %1891 = vmatprep.subr.bf16.mxu0 %v1890_v51 }
 0x238   :  { %1893 = vmatpush1.bf16.msra.mxu0 %v1892_v54 }
 0x23b   :  { %879 = vmatmul.mubr.f32.vlgmr.msra.gmra.mrb[24].mxu0 %v2743_v7  ;;  %v1489_v7 = vld [vmem:[%s3141_s5 + $0x120] sm:$0xff] }
 0x23c   :  { %884 = vmatprep.mubr.f32.mxu0 %v427_v19  ;;  %v1912_v11 = vpack.c.bf16 %v1490_v8, %v1489_v7  ;;  %v1493_v19 = vld [vmem:[%s3141_s5 + $0x140] sm:$0xff]  ;;  %v920_v8 = vld [vmem:[%s3142_s2 + $0x8] sm:$0xff] }
 0x23d   :  { %v919_v7 = vld [vmem:[%s3142_s2] sm:$0xff] }
 0x23e   :  { %1913 = vmatpush3.bf16.msra.mxu1 %v1912_v11  ;;  %v1516_v11 = vld [vmem:[%s3141_s5 + $0x1f8] sm:$0xff] }
 0x23f   :  { %885 = vmatmul.mubr.f32.gmra.mrb[26].mxu0 %v425_v15  ;;  %v1509_v15 = vld [vmem:[%s3141_s5 + $0x1c0] sm:$0xff]  ;;  %1915 = vmatprep.subr.bf16.mxu1 %v1914_v12  ;;  %v1930_v12 = vpack.c.bf16 %v1516_v11, %v1515_v10  ;;  %v1518_v10 = vld [vmem:[%s3141_s5 + $0x208] sm:$0xff]  ;;  %v1535_v11 = vld [vmem:[%s3141_s5 + $0x290] sm:$0xff] }
 0x240   :  { %890 = vmatprep.mubr.f32.mxu0 %v433_v27  ;;  %v1918_v18 = vpack.c.bf16 %v1510_v16, %v1509_v15  ;;  %v1513_v27 = vld [vmem:[%s3141_s5 + $0x1e0] sm:$0xff]  ;;  %v1032_v16 = vld [vmem:[%s3141_s5 + $0x88] sm:$0xff] }
 0x241   :  { %v1926_v30 = vpack.c.bf16 %v1514_v28, %v1513_v27  ;;  %v1031_v15 = vld [vmem:[%s3141_s5 + $0x80] sm:$0xff]  ;;  %v1017_v28 = vld [vmem:[%s3141_s5 + $0x10] sm:$0xff] }
 0x242   :  { %1917 = vmatpush3.bf16.msra.mxu1 %v1916_v17  ;;  %v1934_v17 = vpack.c.bf16 %v1032_v16, %v1031_v15  ;;  %v1520_v15 = vld [vmem:[%s3141_s5 + $0x218] sm:$0xff]  ;;  %v1537_v16 = vld [vmem:[%s3141_s5 + $0x2a0] sm:$0xff] }
 0x243   :  { %891 = vmatmul.mubr.f32.gmra.mrb[28].mxu0 %v431_v23  ;;  %v1920_v23 = vpack.c.bf16 %v1494_v20, %v1493_v19  ;;  %1919 = vmatprep.subr.bf16.mxu1 %v1918_v18  ;;  %v1015_v20 = vld [vmem:[%s3141_s5] sm:$0xff] }
 0x244   :  { %896 = vmatprep.mubr.f32.mxu0 %v439_v35  ;;  %v1936_v25 = vpack.c.bf16 %v1016_v21, %v1015_v20  ;;  %v1521_v21 = vld [vmem:[%s3141_s5 + $0x220] sm:$0xff] }
 0x246   :  { %1921 = vmatpush3.bf16.msra.mxu1 %v1920_v23  ;;  %v1034_v23 = vld [vmem:[%s3141_s5 + $0x98] sm:$0xff] }
 0x247   :  { %897 = vmatmul.mubr.f32.gmra.mrb[30].mxu0 %v437_v31  ;;  %1923 = vmatprep.subr.bf16.mxu1 %v1922_v24  ;;  %v1497_v31 = vld [vmem:[%s3141_s5 + $0x160] sm:$0xff]  ;;  %v1938_v27 = vpack.c.bf16 %v1034_v23, %v1033_v22  ;;  %v1522_v22 = vld [vmem:[%s3141_s5 + $0x228] sm:$0xff]  ;;  %v1539_v23 = vld [vmem:[%s3141_s5 + $0x2b0] sm:$0xff] }
 0x248   :  { %996 = vmatprep.mubr.f32.mxu0 %v2017_v3  ;;  %v1928_v33 = vpack.c.bf16 %v1498_v32, %v1497_v31  ;;  %v1036_v31 = vld [vmem:[%s3141_s5 + $0xa8] sm:$0xff] }
 0x24a   :  { %1925 = vmatpush3.bf16.msra.mxu1 %v1924_v29  ;;  %v1018_v29 = vld [vmem:[%s3141_s5 + $0x18] sm:$0xff] }
 0x24b   :  { %1927 = vmatprep.subr.bf16.mxu1 %v1926_v30  ;;  %v1035_v30 = vld [vmem:[%s3141_s5 + $0xa0] sm:$0xff]  ;;  %v1940_v32 = vpack.c.bf16 %v1018_v29, %v1017_v28  ;;  %v1542_v29 = vld [vmem:[%s3141_s5 + $0x2c8] sm:$0xff] }
 0x24c   :  { %v1541_v28 = vld [vmem:[%s3141_s5 + $0x2c0] sm:$0xff] }
 0x24e   :  { %1929 = vmatpush3.bf16.msra.mxu1 %v1928_v33 }
 0x24f   :  { %1931 = vmatprep.subr.bf16.mxu1 %v1930_v12  ;;  %v1536_v12 = vld [vmem:[%s3141_s5 + $0x298] sm:$0xff] }
 0x2de   :  { %v637_v34 = vpop.f32.mrb[24].mxu1 }
 0x2df   :  { %v639_v35 = vpop.f32.mrb[25].mxu1 }
 0x2e2   :  { %v643_v36 = vpop.f32.mrb[26].mxu1 }
 0x2e3   :  { %v645_v37 = vpop.f32.mrb[27].mxu1 }
 0x2e6   :  { %v649_v38 = vpop.f32.mrb[28].mxu1 }
 0x2e7   :  { %v651_v39 = vpop.f32.mrb[29].mxu1 }
 0x2ea   :  { %v655_v40 = vpop.f32.mrb[30].mxu1 }
 0x2eb   :  { %v657_v41 = vpop.f32.mrb[31].mxu1 }
 0x30e   :  { %v880_v42 = vpop.f32.mrb[24].mxu0 }
 0x30f   :  { %v1998_v43 = vadd.f32 %v880_v42, %v637_v34  ;;  %v882_v44 = vpop.f32.mrb[25].mxu0  ;;  %v1942_v34 = vpack.c.bf16 %v1036_v31, %v1035_v30  ;;  %v1021_v42 = vld [vmem:[%s3141_s5 + $0x30] sm:$0xff]  ;;  %v1982_v31 = vpack.c.bf16 %v1542_v29, %v1541_v28 }
 0x310   :  { %v1999_v45 = vadd.f32 %v882_v44, %v639_v35  ;;  %v1019_v35 = vld [vmem:[%s3141_s5 + $0x20] sm:$0xff] }
 0x311   :  { %v911_v50 = vmax.f32 %v1998_v43, 0.0  ;;  %v1022_v43 = vld [vmem:[%s3141_s5 + $0x38] sm:$0xff]  ;;  %v1039_v44 = vld [vmem:[%s3141_s5 + $0xc0] sm:$0xff] }
 0x312   :  { %v886_v46 = vpop.f32.mrb[26].mxu0  ;;  %v912_v52 = vmax.f32 %v1999_v45, 0.0  ;;  %v1040_v45 = vld [vmem:[%s3141_s5 + $0xc8] sm:$0xff] }
 0x313   :  { %v2000_v47 = vadd.f32 %v886_v46, %v643_v36  ;;  %v888_v48 = vpop.f32.mrb[27].mxu0  ;;  %v1020_v36 = vld [vmem:[%s3141_s5 + $0x28] sm:$0xff]  ;;  %v1948_v46 = vpack.c.bf16 %v1022_v43, %v1021_v42 }
 0x314   :  { %v2001_v49 = vadd.f32 %v888_v48, %v645_v37  ;;  %v1023_v48 = vld [vmem:[%s3141_s5 + $0x40] sm:$0xff]  ;;  %v1546_v42 = vld [vmem:[%s3141_s5 + $0x2e8] sm:$0xff] }
 0x315   :  { %v913_v51 = vmax.f32 %v2000_v47, 0.0  ;;  %v1950_v47 = vpack.c.bf16 %v1040_v45, %v1039_v44  ;;  %v1529_v45 = vld [vmem:[%s3141_s5 + $0x260] sm:$0xff] }
 0x316   :  { %v914_v53 = vmax.f32 %v2001_v49, 0.0  ;;  %v892_v54 = vpop.f32.mrb[28].mxu0  ;;  %v1024_v49 = vld [vmem:[%s3141_s5 + $0x48] sm:$0xff] }
 0x317   :  { %v1896_v55 = vpack.c.bf16 %v913_v51, %v911_v50  ;;  %v2002_v56 = vadd.f32 %v892_v54, %v649_v38  ;;  %v894_v57 = vpop.f32.mrb[29].mxu0  ;;  %v1037_v38 = vld [vmem:[%s3141_s5 + $0xb0] sm:$0xff]  ;;  %v1042_v51 = vld [vmem:[%s3141_s5 + $0xd8] sm:$0xff] }
 0x318   :  { %v1894_v58 = vpack.c.bf16 %v914_v53, %v912_v52  ;;  %v2003_v59 = vadd.f32 %v894_v57, %v651_v39  ;;  %v1038_v39 = vld [vmem:[%s3141_s5 + $0xb8] sm:$0xff]  ;;  %v1041_v50 = vld [vmem:[%s3141_s5 + $0xd0] sm:$0xff]  ;;  %v1952_v52 = vpack.c.bf16 %v1024_v49, %v1023_v48  ;;  %v1044_v57 = vld [vmem:[%s3141_s5 + $0xe8] sm:$0xff] }
 0x319   :  { %v915_v0 = vmax.f32 %v2002_v56, 0.0  ;;  %v1954_v53 = vpack.c.bf16 %v1042_v51, %v1041_v50  ;;  %v1025_v54 = vld [vmem:[%s3141_s5 + $0x50] sm:$0xff]  ;;  %v1043_v56 = vld [vmem:[%s3141_s5 + $0xe0] sm:$0xff]  ;;  %v1548_v48 = vld [vmem:[%s3141_s5 + $0x2f8] sm:$0xff] }
 0x31a   :  { %v898_v60 = vpop.f32.mrb[30].mxu0  ;;  %1895 = vmatprep.subr.bf16.mxu0 %v1894_v58  ;;  %v916_v2 = vmax.f32 %v2003_v59, 0.0  ;;  %v1958_v59 = vpack.c.bf16 %v1044_v57, %v1043_v56  ;;  %v1531_v51 = vld [vmem:[%s3141_s5 + $0x270] sm:$0xff] }
 0x31b   :  { %v2004_v61 = vadd.f32 %v898_v60, %v655_v40  ;;  %v900_v62 = vpop.f32.mrb[31].mxu0  ;;  %1897 = vmatpush1.bf16.msra.mxu0 %v1896_v55  ;;  %v1944_v40 = vpack.c.bf16 %v1020_v36, %v1019_v35  ;;  %v1026_v55 = vld [vmem:[%s3141_s5 + $0x58] sm:$0xff]  ;;  %v1027_v60 = vld [vmem:[%s3141_s5 + $0x60] sm:$0xff]  ;;  %v1543_v35 = vld [vmem:[%s3141_s5 + $0x2d0] sm:$0xff] }
 0x31c   :  { %v2005_v63 = vadd.f32 %v900_v62, %v657_v41  ;;  %v1946_v41 = vpack.c.bf16 %v1038_v39, %v1037_v38  ;;  %v1956_v58 = vpack.c.bf16 %v1026_v55, %v1025_v54  ;;  %v1045_v62 = vld [vmem:[%s3141_s5 + $0xf0] sm:$0xff]  ;;  %v1544_v36 = vld [vmem:[%s3141_s5 + $0x2d8] sm:$0xff] }
 0x31d   :  { %v917_v1 = vmax.f32 %v2004_v61, 0.0  ;;  %v1028_v61 = vld [vmem:[%s3141_s5 + $0x68] sm:$0xff]  ;;  %v1986_v38 = vpack.c.bf16 %v1544_v36, %v1543_v35  ;;  %v1527_v39 = vld [vmem:[%s3141_s5 + $0x250] sm:$0xff] }
 0x31e   :  { %v918_v4 = vmax.f32 %v2005_v63, 0.0  ;;  %v1046_v63 = vld [vmem:[%s3141_s5 + $0xf8] sm:$0xff] }
 0x31f   :  { %v1900_v5 = vpack.c.bf16 %v917_v1, %v915_v0  ;;  %v1960_v0 = vpack.c.bf16 %v1028_v61, %v1027_v60  ;;  %v1962_v1 = vpack.c.bf16 %v1046_v63, %v1045_v62 }
 0x320   :  { %v1898_v6 = vpack.c.bf16 %v918_v4, %v916_v2  ;;  %v1029_v2 = vld [vmem:[%s3141_s5 + $0x70] sm:$0xff]  ;;  %v1030_v4 = vld [vmem:[%s3141_s5 + $0x78] sm:$0xff] }
 0x322   :  { %1899 = vmatprep.subr.bf16.mxu0 %v1898_v6  ;;  %v1534_v6 = vld [vmem:[%s3141_s5 + $0x288] sm:$0xff] }
 0x323   :  { %1901 = vmatpush1.bf16.msra.mxu0 %v1900_v5  ;;  %v1533_v5 = vld [vmem:[%s3141_s5 + $0x280] sm:$0xff] }
 0x326   :  { %1482 = vmatmul.mubr.msk.f32.vlgmr.msra.gmra.mrb[32].mxu0 %vm922_vm1, %v919_v7  ;;  %v1964_v7 = vpack.c.bf16 %v1030_v4, %v1029_v2 }
 0x327   :  { %1002 = vmatprep.mubr.f32.mxu0 %v2017_v3 }
 0x32a   :  { %1483 = vmatmul.mubr.msk.f32.gmra.mrb[34].mxu0 %vm922_vm1, %v920_v8  ;;  %v1966_v8 = vpack.c.bf16 %v1534_v6, %v1533_v5 }
 0x32b   :  { %1008 = vmatprep.mubr.f32.mxu0 %v2017_v3  ;;  %v1500_v3 = vld [vmem:[%s3141_s5 + $0x178] sm:$0xff] }
 0x32c   :  { %v1932_v14 = vpack.c.bf16 %v1500_v3, %v1499_v13  ;;  %v1970_v3 = vpack.c.bf16 %v1536_v12, %v1535_v11 }
 0x32e   :  { %1484 = vmatmul.mubr.msk.f32.gmra.mrb[36].mxu0 %vm922_vm1, %v921_v9  ;;  %1933 = vmatpush3.bf16.msra.mxu1 %v1932_v14  ;;  %v1517_v9 = vld [vmem:[%s3141_s5 + $0x200] sm:$0xff]  ;;  %v1519_v14 = vld [vmem:[%s3141_s5 + $0x210] sm:$0xff] }
 0x32f   :  { %1935 = vmatprep.subr.bf16.mxu1 %v1934_v17  ;;  %v1968_v13 = vpack.c.bf16 %v1518_v10, %v1517_v9  ;;  %v1538_v17 = vld [vmem:[%s3141_s5 + $0x2a8] sm:$0xff] }
 0x330   :  { %v1974_v20 = vpack.c.bf16 %v1538_v17, %v1537_v16 }
 0x3f9   :  { %v2941_v18 = vpop.f32.mrb[32].mxu0 }
 0x3fa   :  { %v1000_v19 = vpop.f32.mrb[33].mxu0 }
 0x3fd   :  { %v1004_v24 = vpop.f32.mrb[34].mxu0 }
 0x3fe   :  { %v1006_v26 = vpop.f32.mrb[35].mxu0 }
 0x3ff   :  { %1144 = vmatprep.mubr.f32.mxu1 %v1006_v26  ;;  %v1523_v26 = vld [vmem:[%s3141_s5 + $0x230] sm:$0xff] }
 0x400   :  { %1145 = vmatmul.mubr.f32.vlgmr.msra.gmra.mrb[32].mxu1 %v1004_v24  ;;  %v1976_v24 = vpack.c.bf16 %v1522_v22, %v1521_v21 }
 0x401   :  { %1937 = vmatpush3.bf16.msra.mxu1 %v1936_v25  ;;  %1214 = vmatprep.mubr.f32.mxu1 %v1000_v19  ;;  %v2967_v33 = vpop.f32.mrb[36].mxu0  ;;  %v1972_v19 = vpack.c.bf16 %v1520_v15, %v1519_v14 }
 0x402   :  { %1939 = vmatprep.subr.bf16.mxu1 %v1938_v27  ;;  %v1012_v37 = vpop.f32.mrb[37].mxu0  ;;  %v1524_v27 = vld [vmem:[%s3141_s5 + $0x238] sm:$0xff] }
 0x403   :  { %v1980_v30 = vpack.c.bf16 %v1524_v27, %v1523_v26 }
 0x405   :  { %1941 = vmatpush3.bf16.msra.mxu1 %v1940_v32  ;;  %v1525_v32 = vld [vmem:[%s3141_s5 + $0x240] sm:$0xff] }
 0x406   :  { %1943 = vmatprep.subr.bf16.mxu1 %v1942_v34  ;;  %v1526_v34 = vld [vmem:[%s3141_s5 + $0x248] sm:$0xff] }
 0x409   :  { %1945 = vmatpush3.bf16.msra.mxu1 %v1944_v40  ;;  %v1528_v40 = vld [vmem:[%s3141_s5 + $0x258] sm:$0xff] }
 0x40a   :  { %1947 = vmatprep.subr.bf16.mxu1 %v1946_v41  ;;  %v1545_v41 = vld [vmem:[%s3141_s5 + $0x2e0] sm:$0xff]  ;;  %v1988_v43 = vpack.c.bf16 %v1528_v40, %v1527_v39 }
 0x40b   :  { %v1990_v44 = vpack.c.bf16 %v1546_v42, %v1545_v41 }
 0x40d   :  { %1949 = vmatpush3.bf16.msra.mxu1 %v1948_v46  ;;  %v1530_v46 = vld [vmem:[%s3141_s5 + $0x268] sm:$0xff] }
 0x40e   :  { %1951 = vmatprep.subr.bf16.mxu1 %v1950_v47  ;;  %v1547_v47 = vld [vmem:[%s3141_s5 + $0x2f0] sm:$0xff]  ;;  %v1992_v49 = vpack.c.bf16 %v1530_v46, %v1529_v45 }
 0x40f   :  { %v1994_v50 = vpack.c.bf16 %v1548_v48, %v1547_v47 }
 0x411   :  { %1953 = vmatpush3.bf16.msra.mxu1 %v1952_v52  ;;  %v1532_v52 = vld [vmem:[%s3141_s5 + $0x278] sm:$0xff] }
 0x412   :  { %1955 = vmatprep.subr.bf16.mxu1 %v1954_v53  ;;  %v1996_v53 = vpack.c.bf16 %v1532_v52, %v1531_v51 }
 0x415   :  { %1957 = vmatpush3.bf16.msra.mxu1 %v1956_v58 }
 0x416   :  { %1959 = vmatprep.subr.bf16.mxu1 %v1958_v59 }
 0x419   :  { %1961 = vmatpush3.bf16.msra.mxu1 %v1960_v0 }
 0x41a   :  { %1963 = vmatprep.subr.bf16.mxu1 %v1962_v1 }
 0x41d   :  { %1965 = vmatpush3.bf16.msra.mxu1 %v1964_v7 }
 0x41e   :  { %1967 = vmatprep.subr.bf16.mxu1 %v1966_v8 }
 0x420   :  { %1215 = vmatmul.mubr.f32.vlgmr.msra.gmra.mrb[34].mxu1 %v2941_v18  ;;  %v1540_v18 = vld [vmem:[%s3141_s5 + $0x2b8] sm:$0xff] }
 0x421   :  { %1969 = vmatpush3.bf16.msra.mxu1 %v1968_v13  ;;  %1317 = vmatprep.mubr.f32.mxu1 %v1012_v37  ;;  %v1978_v25 = vpack.c.bf16 %v1540_v18, %v1539_v23  ;;  %v1984_v37 = vpack.c.bf16 %v1526_v34, %v1525_v32 }
 0x422   :  { %1971 = vmatprep.subr.bf16.mxu1 %v1970_v3 }
 0x425   :  { %1973 = vmatpush3.bf16.msra.mxu1 %v1972_v19 }
 0x426   :  { %1975 = vmatprep.subr.bf16.mxu1 %v1974_v20 }
 0x429   :  { %1977 = vmatpush3.bf16.msra.mxu1 %v1976_v24 }
 0x42a   :  { %1979 = vmatprep.subr.bf16.mxu1 %v1978_v25 }
 0x42d   :  { %1981 = vmatpush3.bf16.msra.mxu1 %v1980_v30 }
 0x42e   :  { %1983 = vmatprep.subr.bf16.mxu1 %v1982_v31 }
 0x431   :  { %1985 = vmatpush3.bf16.msra.mxu1 %v1984_v37 }
 0x432   :  { %1987 = vmatprep.subr.bf16.mxu1 %v1986_v38 }
 0x435   :  { %1989 = vmatpush3.bf16.msra.mxu1 %v1988_v43 }
 0x436   :  { %1991 = vmatprep.subr.bf16.mxu1 %v1990_v44 }
 0x439   :  { %1993 = vmatpush3.bf16.msra.mxu1 %v1992_v49 }
 0x43a   :  { %1995 = vmatprep.subr.bf16.mxu1 %v1994_v50 }
 0x43d   :  { %1997 = vmatpush3.bf16.msra.mxu1 %v1996_v53 }
 0x440   :  { %1318 = vmatmul.mubr.f32.vlgmr.msra.gmra.mrb[36].mxu1 %v2967_v33 }
 0x4d3   :  { %v1581_v54 = vpop.f32.mrb[32].mxu1 }
 0x4d4   :  { %v1582_v55 = vpop.f32.mrb[33].mxu1 }
 0x4d5   :  { %v1583_v56 = vadd.f32 %v1582_v55, %v1581_v54 }
 0x4f3   :  { %v1616_v57 = vpop.f32.mrb[34].mxu1 }
 0x4f4   :  { %v1617_v58 = vpop.f32.mrb[35].mxu1 }
 0x4f5   :  { %v1618_v59 = vadd.f32 %v1617_v58, %v1616_v57 }
 0x4f7   :  { %v1217_v60 = vadd.f32 %v1618_v59, %v1583_v56 }
 0x513   :  { %v1651_v61 = vpop.f32.mrb[36].mxu1 }
 0x514   :  { %v1652_v62 = vpop.f32.mrb[37].mxu1 }
 0x515   :  { %v1653_v63 = vadd.f32 %v1652_v62, %v1651_v61 }
 0x517   :  { %v1323_v0 = vadd.f32 %v1653_v63, %v1217_v60 }
 0x519   :  { %2015 = vtanh.f32 %v1323_v0 }
 0x523   :  { %v2016_v1 = vpop.eup %2015 }
 0x524   :  { %1325 = vst.msk [vmem:[%s3143_s6] sm:$0xff] %vm922_vm1, %v2016_v1 }

</bundles_post_ra>
